<compile_context>
chip_gen: v7x
topology: tpu7x:2x2x1
jax: 0.10.0
libtpu: 0.0.40
codegen_flags: <defaults>
</compile_context>

<pallas_src>
import numpy as np
import jax
import jax.numpy as jnp
from jax import lax
from jax.experimental import pallas as pl
from jax.experimental.pallas import tpu as pltpu

# ------------------------- small ModelArgs-equivalent config -------------------------
DIM = 64
N_HEADS = 4
KV_LORA_RANK = 32
QK_NOPE_HEAD_DIM = 16
QK_ROPE_HEAD_DIM = 8
QK_HEAD_DIM = QK_NOPE_HEAD_DIM + QK_ROPE_HEAD_DIM
V_HEAD_DIM = 16
INTER_DIM = 128
EPS = 1e-6
SOFTMAX_SCALE = QK_HEAD_DIM ** -0.5
ROPE_THETA = 10000.0

RHALF = QK_ROPE_HEAD_DIM // 2                    # 4 rope frequencies
QNW = N_HEADS * QK_NOPE_HEAD_DIM                 # 64  : q_nope slab width
RR_OFF = QNW + KV_LORA_RANK                      # 96  : start of rope "real" columns
RI_OFF = RR_OFF + (N_HEADS + 1) * RHALF          # 116 : start of rope "imag" columns
ATTN_IN_W = RI_OFF + (N_HEADS + 1) * RHALF       # 136 : fused attention input-proj width


def _rmsnorm(x, w):
    var = jnp.mean(x * x, axis=-1, keepdims=True)
    return x * lax.rsqrt(var + EPS) * w


def block_kernel(x_ref, cos_ref, sin_ref,
                 attn_nw_ref, w_attn_ref, kv_nw_ref, w_kvb_ref, wo_ref,
                 ffn_nw_ref, w13_ref, w2_ref,
                 out_ref):
    S = x_ref.shape[1]
    x = x_ref[0].astype(jnp.float32)                 # (S, D)
    c20 = cos_ref[...]                               # (S, 20): cos tiled per rope unit
    s20 = sin_ref[...]                               # (S, 20)

    # causal additive mask built in-kernel (finite large-negative, no HBM (S,S) read)
    row = lax.broadcasted_iota(jnp.int32, (S, S), 0)
    col = lax.broadcasted_iota(jnp.int32, (S, S), 1)
    mask_add = jnp.where(col <= row, 0.0, -1e30).astype(jnp.float32)

    # -------------------- attention sub-layer (MLA, naive path) --------------------
    h1 = _rmsnorm(x, attn_nw_ref[...])
    # fused wq|wkv_a projection: columns = [q_nope(64) | kv_lora(32) | rope_re(20) | rope_im(20)]
    proj = jnp.dot(h1.astype(jnp.bfloat16), w_attn_ref[...],
                   preferred_element_type=jnp.float32)            # (S, 136)
    q_nope = proj[:, :QNW]                                        # (S, 64) heads contiguous
    c_kv = _rmsnorm(proj[:, QNW:RR_OFF], kv_nw_ref[...])          # (S, 32)
    rr = proj[:, RR_OFF:RI_OFF]                                   # (S, 20) real parts
    ri = proj[:, RI_OFF:]                                         # (S, 20) imag parts
    # single rope application for all 4 q heads + shared k_pe (VPU only)
    ra = rr * c20 - ri * s20
    rb = ri * c20 + rr * s20
    kr = ra[:, N_HEADS * RHALF:]                                  # (S, 4) shared k_pe (real)
    ki = rb[:, N_HEADS * RHALF:]                                  # (S, 4) shared k_pe (imag)

    # fused kv_b projection: columns = [k_nope heads-contig (64) | v heads-contig (64)]
    kvb = jnp.dot(c_kv.astype(jnp.bfloat16), w_kvb_ref[...],
                  preferred_element_type=jnp.float32)             # (S, 128)

    dn = (((1,), (1,)), ((), ()))     # contract last dims -> q @ k.T without explicit transpose
    outs = []
    for hh in range(N_HEADS):
        q_h = jnp.concatenate(
            [q_nope[:, hh * QK_NOPE_HEAD_DIM:(hh + 1) * QK_NOPE_HEAD_DIM],
             ra[:, hh * RHALF:(hh + 1) * RHALF],
             rb[:, hh * RHALF:(hh + 1) * RHALF]], axis=-1)        # (S, 24)
        k_h = jnp.concatenate(
            [kvb[:, hh * QK_NOPE_HEAD_DIM:(hh + 1) * QK_NOPE_HEAD_DIM], kr, ki],
            axis=-1)                                              # (S, 24)
        s_h = lax.dot_general(q_h.astype(jnp.bfloat16), k_h.astype(jnp.bfloat16),
                              dn, preferred_element_type=jnp.float32)
        s_h = s_h * SOFTMAX_SCALE + mask_add
        s_h = s_h - jnp.max(s_h, axis=-1, keepdims=True)
        p = jnp.exp(s_h)
        p = p * pl.reciprocal(jnp.sum(p, axis=-1, keepdims=True), approx=True)
        v_h = kvb[:, QNW + hh * V_HEAD_DIM:QNW + (hh + 1) * V_HEAD_DIM]
        outs.append(jnp.dot(p.astype(jnp.bfloat16), v_h.astype(jnp.bfloat16),
                            preferred_element_type=jnp.float32))  # (S, 16)
    o_all = jnp.concatenate(outs, axis=-1)                        # (S, 64)
    attn = jnp.dot(o_all.astype(jnp.bfloat16), wo_ref[...],
                   preferred_element_type=jnp.float32)            # (S, D)
    x = x + attn

    # -------------------- ffn sub-layer: w2(silu(w1 x) * w3 x) --------------------
    h2 = _rmsnorm(x, ffn_nw_ref[...])
    gu = jnp.dot(h2.astype(jnp.bfloat16), w13_ref[...],
                 preferred_element_type=jnp.float32)              # (S, 256) = [g | u]
    g = gu[:, :INTER_DIM]
    u = gu[:, INTER_DIM:]
    act = g * (1.0 / (1.0 + jnp.exp(-g)))                          # SiLU
    y = jnp.dot((act * u).astype(jnp.bfloat16), w2_ref[...],
                preferred_element_type=jnp.float32)
    out_ref[0] = (x + y).astype(out_ref.dtype)


def _rope_tables(seq_len, start_pos):
    inv_freq = 1.0 / (ROPE_THETA ** (np.arange(0, QK_ROPE_HEAD_DIM, 2, dtype=np.float32)
                                     / QK_ROPE_HEAD_DIM))
    pos = np.arange(start_pos, start_pos + seq_len, dtype=np.float32)
    ang = pos[:, None] * inv_freq[None, :]                         # (S, RHALF)
    units = N_HEADS + 1                                            # 4 q heads + shared k
    cos = np.tile(np.cos(ang), (1, units)).astype(np.float32)      # (S, 20)
    sin = np.tile(np.sin(ang), (1, units)).astype(np.float32)
    return jnp.asarray(cos), jnp.asarray(sin), ang


def _pack_params(params):
    """Re-layout + fuse + bf16-cast weights for the kernel (semantics-preserving)."""
    H, NOPE, ROPE, V, QKH = N_HEADS, QK_NOPE_HEAD_DIM, QK_ROPE_HEAD_DIM, V_HEAD_DIM, QK_HEAD_DIM
    wq, wkv_a, wkv_b = params["wq"], params["wkv_a"], params["wkv_b"]

    q_nope_idx = np.concatenate([h * QKH + np.arange(NOPE) for h in range(H)])
    q_re_idx = np.concatenate([h * QKH + NOPE + np.arange(0, ROPE, 2) for h in range(H)])
    q_im_idx = np.concatenate([h * QKH + NOPE + np.arange(1, ROPE, 2) for h in range(H)])
    k_re_idx = KV_LORA_RANK + np.arange(0, ROPE, 2)
    k_im_idx = KV_LORA_RANK + np.arange(1, ROPE, 2)
    w_attn = jnp.concatenate(
        [wq[:, q_nope_idx],                          # 64  q_nope (heads contiguous)
         wkv_a[:, :KV_LORA_RANK],                    # 32  kv lora
         wq[:, q_re_idx], wkv_a[:, k_re_idx],        # 20  rope real parts
         wq[:, q_im_idx], wkv_a[:, k_im_idx]],       # 20  rope imag parts
        axis=1).astype(jnp.bfloat16)                 # (DIM, 136)

    kn_idx = np.concatenate([h * (NOPE + V) + np.arange(NOPE) for h in range(H)])
    v_idx = np.concatenate([h * (NOPE + V) + NOPE + np.arange(V) for h in range(H)])
    w_kvb = jnp.concatenate([wkv_b[:, kn_idx], wkv_b[:, v_idx]],
                            axis=1).astype(jnp.bfloat16)           # (KV_RANK, 128)

    w13 = jnp.concatenate([params["w1"], params["w3"]], axis=1).astype(jnp.bfloat16)  # (DIM,256)

    return dict(
        attn_norm_w=params["attn_norm_w"], kv_norm_w=params["kv_norm_w"],
        ffn_norm_w=params["ffn_norm_w"],
        w_attn=w_attn, w_kvb=w_kvb, wo=params["wo"].astype(jnp.bfloat16),
        w13=w13, w2=params["w2"].astype(jnp.bfloat16))


def transformer_block(x, params, start_pos=0):
    B, S, D = x.shape
    cos, sin, _ = _rope_tables(S, start_pos)
    pk = _pack_params(params)

    inputs = (x, cos, sin,
              pk["attn_norm_w"], pk["w_attn"], pk["kv_norm_w"], pk["w_kvb"], pk["wo"],
              pk["ffn_norm_w"], pk["w13"], pk["w2"])

    def full_spec(a):
        nd = a.ndim
        return pl.BlockSpec(a.shape, lambda b, _nd=nd: (0,) * _nd)

    in_specs = [pl.BlockSpec((1, S, D), lambda b: (b, 0, 0))] + [full_spec(a) for a in inputs[1:]]
    out_spec = pl.BlockSpec((1, S, D), lambda b: (b, 0, 0))

    return pl.pallas_call(
        block_kernel,
        out_shape=jax.ShapeDtypeStruct((B, S, D), x.dtype),
        grid=(B,),
        in_specs=in_specs,
        out_specs=out_spec,
        compiler_params=pltpu.CompilerParams(dimension_semantics=("parallel",)),
    )(*inputs)


def init_params(key):
    ks = jax.random.split(key, 7)

    def lin(k, fan_in, fan_out):  # roughly nn.Linear-like scale; stored (in, out)
        bound = 1.0 / np.sqrt(fan_in)
        return jax.random.uniform(k, (fan_in, fan_out), jnp.float32, -bound, bound)

    return dict(
        attn_norm_w=jnp.ones((1, DIM), jnp.float32),
        wq=lin(ks[0], DIM, N_HEADS * QK_HEAD_DIM),
        wkv_a=lin(ks[1], DIM, KV_LORA_RANK + QK_ROPE_HEAD_DIM),
        kv_norm_w=jnp.ones((1, KV_LORA_RANK), jnp.float32),
        wkv_b=lin(ks[2], KV_LORA_RANK, N_HEADS * (QK_NOPE_HEAD_DIM + V_HEAD_DIM)),
        wo=lin(ks[3], N_HEADS * V_HEAD_DIM, DIM),
        ffn_norm_w=jnp.ones((1, DIM), jnp.float32),
        w1=lin(ks[4], DIM, INTER_DIM),
        w2=lin(ks[5], INTER_DIM, DIM),
        w3=lin(ks[6], DIM, INTER_DIM),
    )


def reference_block(x, params, start_pos=0):
    """Plain-JAX mirror of the PyTorch Block forward (MLA naive path + dense MLP), f32."""
    B, S, D = x.shape
    hp = lax.Precision.HIGHEST
    half = QK_ROPE_HEAD_DIM // 2
    _, _, ang = _rope_tables(S, start_pos)
    cos, sin = jnp.cos(jnp.asarray(ang)), jnp.sin(jnp.asarray(ang))   # (S, half)

    def rmsnorm(t, w):
        return t * lax.rsqrt(jnp.mean(t * t, -1, keepdims=True) + EPS) * w.reshape(-1)

    def rope(t):  # t: (B, S, H, ROPE), interleaved pairs
        lead = t.shape[:-1]
        t = t.reshape(lead + (half, 2))
        t0, t1 = t[..., 0], t[..., 1]
        c = cos[None, :, None, :]
        s = sin[None, :, None, :]
        o0 = t0 * c - t1 * s
        o1 = t0 * s + t1 * c
        return jnp.stack([o0, o1], axis=-1).reshape(lead + (QK_ROPE_HEAD_DIM,))

    h = rmsnorm(x, params["attn_norm_w"])
    q = jnp.einsum("bsd,de->bse", h, params["wq"], precision=hp).reshape(B, S, N_HEADS, QK_HEAD_DIM)
    q_nope, q_pe = q[..., :QK_NOPE_HEAD_DIM], rope(q[..., QK_NOPE_HEAD_DIM:])
    kv_a = jnp.einsum("bsd,de->bse", h, params["wkv_a"], precision=hp)
    c_kv, k_pe = kv_a[..., :KV_LORA_RANK], rope(kv_a[..., None, KV_LORA_RANK:])
    kvb = jnp.einsum("bsr,re->bse", rmsnorm(c_kv, params["kv_norm_w"]), params["wkv_b"],
                     precision=hp).reshape(B, S, N_HEADS, QK_NOPE_HEAD_DIM + V_HEAD_DIM)
    k_nope, v = kvb[..., :QK_NOPE_HEAD_DIM], kvb[..., QK_NOPE_HEAD_DIM:]
    k = jnp.concatenate([k_nope, jnp.broadcast_to(k_pe, (B, S, N_HEADS, QK_ROPE_HEAD_DIM))], -1)
    qc = jnp.concatenate([q_nope, q_pe], -1)
    scores = jnp.einsum("bshd,bthd->bsht", qc, k, precision=hp) * SOFTMAX_SCALE
    mask = jnp.triu(jnp.full((S, S), float("-inf"), jnp.float32), k=1)
    scores = scores + mask[None, :, None, :]
    p = jax.nn.softmax(scores, axis=-1)
    o = jnp.einsum("bsht,bthd->bshd", p, v, precision=hp).reshape(B, S, N_HEADS * V_HEAD_DIM)
    x = x + jnp.einsum("bse,ed->bsd", o, params["wo"], precision=hp)

    h = rmsnorm(x, params["ffn_norm_w"])
    g = jnp.einsum("bsd,de->bse", h, params["w1"], precision=hp)
    u = jnp.einsum("bsd,de->bse", h, params["w3"], precision=hp)
    y = jnp.einsum("bse,ed->bsd", jax.nn.silu(g) * u, params["w2"], precision=hp)
    return x + y


if __name__ == "__main__":
    B, S = 2, 8
    key = jax.random.PRNGKey(0)
    kx, kp = jax.random.split(key)
    x = jax.random.normal(kx, (B, S, DIM), jnp.float32)
    params = init_params(kp)

    out = transformer_block(x, params, start_pos=0)
    jax.block_until_ready(out)

    ref = reference_block(x, params, start_pos=0)
    # bf16 MXU operands (deliberate, per perf review) -> relaxed tolerance vs f32-HIGHEST ref.
    np.testing.assert_allclose(np.asarray(out), np.asarray(ref), rtol=2e-2, atol=2e-2)
    print("KERNEL_OK")
</pallas_src>

<mosaic_0001>
module attributes {stable_mosaic.version = 11 : i64} {
  func.func @block_kernel(%arg0: i32, %arg1: memref<1x8x64xf32, #tpu.memory_space<vmem>>, %arg2: memref<8x20xf32, #tpu.memory_space<vmem>>, %arg3: memref<8x20xf32, #tpu.memory_space<vmem>>, %arg4: memref<1x64xf32, #tpu.memory_space<vmem>>, %arg5: memref<64x136xbf16, #tpu.memory_space<vmem>>, %arg6: memref<1x32xf32, #tpu.memory_space<vmem>>, %arg7: memref<32x128xbf16, #tpu.memory_space<vmem>>, %arg8: memref<64x64xbf16, #tpu.memory_space<vmem>>, %arg9: memref<1x64xf32, #tpu.memory_space<vmem>>, %arg10: memref<64x256xbf16, #tpu.memory_space<vmem>>, %arg11: memref<128x64xbf16, #tpu.memory_space<vmem>>, %arg12: memref<1x8x64xf32, #tpu.memory_space<vmem>>) attributes {dimension_semantics = [#tpu.dimension_semantics<parallel>], iteration_bounds = array<i64: 2>, scalar_prefetch = 0 : i64, scratch_operands = 0 : i64, tpu.core_type = #tpu.core_type<tc>, window_params = [{transform_indices = @transform_0, window_bounds = array<i64: 1, 8, 64>}, {pipeline_mode = #tpu.pipeline_mode<synchronous>, transform_indices = @transform_1, window_bounds = array<i64: 8, 20>}, {pipeline_mode = #tpu.pipeline_mode<synchronous>, transform_indices = @transform_2, window_bounds = array<i64: 8, 20>}, {pipeline_mode = #tpu.pipeline_mode<synchronous>, transform_indices = @transform_3, window_bounds = array<i64: 1, 64>}, {pipeline_mode = #tpu.pipeline_mode<synchronous>, transform_indices = @transform_4, window_bounds = array<i64: 64, 136>}, {pipeline_mode = #tpu.pipeline_mode<synchronous>, transform_indices = @transform_5, window_bounds = array<i64: 1, 32>}, {pipeline_mode = #tpu.pipeline_mode<synchronous>, transform_indices = @transform_6, window_bounds = array<i64: 32, 128>}, {pipeline_mode = #tpu.pipeline_mode<synchronous>, transform_indices = @transform_7, window_bounds = array<i64: 64, 64>}, {pipeline_mode = #tpu.pipeline_mode<synchronous>, transform_indices = @transform_8, window_bounds = array<i64: 1, 64>}, {pipeline_mode = #tpu.pipeline_mode<synchronous>, transform_indices = @transform_9, window_bounds = array<i64: 64, 256>}, {pipeline_mode = #tpu.pipeline_mode<synchronous>, transform_indices = @transform_10, window_bounds = array<i64: 128, 64>}, {transform_indices = @transform_11, window_bounds = array<i64: 1, 8, 64>}]} {
    %c0 = arith.constant 0 : index
    %c0_0 = arith.constant 0 : index
    %c0_1 = arith.constant 0 : index
    %0 = vector.load %arg1[%c0, %c0_0, %c0_1] : memref<1x8x64xf32, #tpu.memory_space<vmem>>, vector<1x8x64xf32>
    %1 = vector.shape_cast %0 : vector<1x8x64xf32> to vector<8x64xf32>
    %c0_2 = arith.constant 0 : index
    %c0_3 = arith.constant 0 : index
    %2 = vector.load %arg2[%c0_2, %c0_3] : memref<8x20xf32, #tpu.memory_space<vmem>>, vector<8x20xf32>
    %c0_4 = arith.constant 0 : index
    %c0_5 = arith.constant 0 : index
    %3 = vector.load %arg3[%c0_4, %c0_5] : memref<8x20xf32, #tpu.memory_space<vmem>>, vector<8x20xf32>
    %4 = tpu.iota {dimensions = array<i32: 0>} : vector<8x8xi32>
    %5 = tpu.iota {dimensions = array<i32: 1>} : vector<8x8xi32>
    %6 = arith.cmpi sle, %5, %4 : vector<8x8xi32>
    %cst = arith.constant 0.000000e+00 : f32
    %cst_6 = arith.constant -1.000000e+30 : f32
    %7 = vector.broadcast %cst : f32 to vector<8x8xf32>
    %8 = vector.broadcast %cst_6 : f32 to vector<8x8xf32>
    %9 = arith.select %6, %7, %8 : vector<8x8xi1>, vector<8x8xf32>
    %c0_7 = arith.constant 0 : index
    %c0_8 = arith.constant 0 : index
    %10 = vector.load %arg4[%c0_7, %c0_8] : memref<1x64xf32, #tpu.memory_space<vmem>>, vector<1x64xf32>
    %11 = arith.mulf %1, %1 : vector<8x64xf32>
    %cst_9 = arith.constant dense<0.000000e+00> : vector<8xf32>
    %12 = vector.multi_reduction <add>, %11, %cst_9 [1] : vector<8x64xf32> to vector<8xf32>
    %13 = vector.shape_cast %12 : vector<8xf32> to vector<8x1xf32>
    %cst_10 = arith.constant 6.400000e+01 : f32
    %14 = vector.broadcast %cst_10 : f32 to vector<8x1xf32>
    %15 = arith.divf %13, %14 : vector<8x1xf32>
    %cst_11 = arith.constant 9.99999997E-7 : f32
    %16 = vector.broadcast %cst_11 : f32 to vector<8x1xf32>
    %17 = arith.addf %15, %16 : vector<8x1xf32>
    %18 = math.rsqrt %17 : vector<8x1xf32>
    %19 = vector.broadcast %18 : vector<8x1xf32> to vector<8x64xf32>
    %20 = arith.mulf %1, %19 : vector<8x64xf32>
    %21 = vector.broadcast %10 : vector<1x64xf32> to vector<8x64xf32>
    %22 = arith.mulf %20, %21 : vector<8x64xf32>
    %23 = arith.truncf %22 : vector<8x64xf32> to vector<8x64xbf16>
    %c0_12 = arith.constant 0 : index
    %c0_13 = arith.constant 0 : index
    %24 = vector.load %arg5[%c0_12, %c0_13] : memref<64x136xbf16, #tpu.memory_space<vmem>>, vector<64x136xbf16>
    %cst_14 = arith.constant dense<0.000000e+00> : vector<8x136xf32>
    %25 = tpu.matmul %23, %24, %cst_14 {dimension_numbers = #tpu.dot_dimension_numbers<[1], [0], [0], [1], [0, 0, 1, 1], [], []>} : vector<8x64xbf16>, vector<64x136xbf16>, vector<8x136xf32> -> vector<8x136xf32>
    %26 = vector.extract_strided_slice %25 {offsets = [0, 0], sizes = [8, 64], strides = [1, 1]} : vector<8x136xf32> to vector<8x64xf32>
    %27 = vector.extract_strided_slice %25 {offsets = [0, 64], sizes = [8, 32], strides = [1, 1]} : vector<8x136xf32> to vector<8x32xf32>
    %c0_15 = arith.constant 0 : index
    %c0_16 = arith.constant 0 : index
    %28 = vector.load %arg6[%c0_15, %c0_16] : memref<1x32xf32, #tpu.memory_space<vmem>>, vector<1x32xf32>
    %29 = arith.mulf %27, %27 : vector<8x32xf32>
    %cst_17 = arith.constant dense<0.000000e+00> : vector<8xf32>
    %30 = vector.multi_reduction <add>, %29, %cst_17 [1] : vector<8x32xf32> to vector<8xf32>
    %31 = vector.shape_cast %30 : vector<8xf32> to vector<8x1xf32>
    %cst_18 = arith.constant 3.200000e+01 : f32
    %32 = vector.broadcast %cst_18 : f32 to vector<8x1xf32>
    %33 = arith.divf %31, %32 : vector<8x1xf32>
    %cst_19 = arith.constant 9.99999997E-7 : f32
    %34 = vector.broadcast %cst_19 : f32 to vector<8x1xf32>
    %35 = arith.addf %33, %34 : vector<8x1xf32>
    %36 = math.rsqrt %35 : vector<8x1xf32>
    %37 = vector.broadcast %36 : vector<8x1xf32> to vector<8x32xf32>
    %38 = arith.mulf %27, %37 : vector<8x32xf32>
    %39 = vector.broadcast %28 : vector<1x32xf32> to vector<8x32xf32>
    %40 = arith.mulf %38, %39 : vector<8x32xf32>
    %41 = vector.extract_strided_slice %25 {offsets = [0, 96], sizes = [8, 20], strides = [1, 1]} : vector<8x136xf32> to vector<8x20xf32>
    %42 = vector.extract_strided_slice %25 {offsets = [0, 116], sizes = [8, 20], strides = [1, 1]} : vector<8x136xf32> to vector<8x20xf32>
    %43 = arith.mulf %41, %2 : vector<8x20xf32>
    %44 = arith.mulf %42, %3 : vector<8x20xf32>
    %45 = arith.subf %43, %44 : vector<8x20xf32>
    %46 = arith.mulf %42, %2 : vector<8x20xf32>
    %47 = arith.mulf %41, %3 : vector<8x20xf32>
    %48 = arith.addf %46, %47 : vector<8x20xf32>
    %49 = vector.extract_strided_slice %45 {offsets = [0, 16], sizes = [8, 4], strides = [1, 1]} : vector<8x20xf32> to vector<8x4xf32>
    %50 = vector.extract_strided_slice %48 {offsets = [0, 16], sizes = [8, 4], strides = [1, 1]} : vector<8x20xf32> to vector<8x4xf32>
    %51 = arith.truncf %40 : vector<8x32xf32> to vector<8x32xbf16>
    %c0_20 = arith.constant 0 : index
    %c0_21 = arith.constant 0 : index
    %52 = vector.load %arg7[%c0_20, %c0_21] : memref<32x128xbf16, #tpu.memory_space<vmem>>, vector<32x128xbf16>
    %cst_22 = arith.constant dense<0.000000e+00> : vector<8x128xf32>
    %53 = tpu.matmul %51, %52, %cst_22 {dimension_numbers = #tpu.dot_dimension_numbers<[1], [0], [0], [1], [0, 0, 1, 1], [], []>} : vector<8x32xbf16>, vector<32x128xbf16>, vector<8x128xf32> -> vector<8x128xf32>
    %54 = vector.extract_strided_slice %26 {offsets = [0, 0], sizes = [8, 16], strides = [1, 1]} : vector<8x64xf32> to vector<8x16xf32>
    %55 = vector.extract_strided_slice %45 {offsets = [0, 0], sizes = [8, 4], strides = [1, 1]} : vector<8x20xf32> to vector<8x4xf32>
    %56 = vector.extract_strided_slice %48 {offsets = [0, 0], sizes = [8, 4], strides = [1, 1]} : vector<8x20xf32> to vector<8x4xf32>
    %57 = tpu.concatenate %54, %55, %56 in 1 : vector<8x16xf32>, vector<8x4xf32>, vector<8x4xf32> -> vector<8x24xf32>
    %58 = vector.extract_strided_slice %53 {offsets = [0, 0], sizes = [8, 16], strides = [1, 1]} : vector<8x128xf32> to vector<8x16xf32>
    %59 = tpu.concatenate %58, %49, %50 in 1 : vector<8x16xf32>, vector<8x4xf32>, vector<8x4xf32> -> vector<8x24xf32>
    %60 = arith.truncf %57 : vector<8x24xf32> to vector<8x24xbf16>
    %61 = arith.truncf %59 : vector<8x24xf32> to vector<8x24xbf16>
    %cst_23 = arith.constant dense<0.000000e+00> : vector<8x8xf32>
    %62 = tpu.matmul %60, %61, %cst_23 {dimension_numbers = #tpu.dot_dimension_numbers<[1], [1], [0], [0], [0, 0, 1, 0], [], []>} : vector<8x24xbf16>, vector<8x24xbf16>, vector<8x8xf32> -> vector<8x8xf32>
    %cst_24 = arith.constant 0.204124153 : f32
    %63 = vector.broadcast %cst_24 : f32 to vector<8x8xf32>
    %64 = arith.mulf %62, %63 : vector<8x8xf32>
    %65 = arith.addf %64, %9 : vector<8x8xf32>
    %cst_25 = arith.constant dense<0xFF800000> : vector<8xf32>
    %66 = vector.multi_reduction <maximumf>, %65, %cst_25 [1] : vector<8x8xf32> to vector<8xf32>
    %67 = vector.shape_cast %66 : vector<8xf32> to vector<8x1xf32>
    %68 = vector.broadcast %67 : vector<8x1xf32> to vector<8x8xf32>
    %69 = arith.subf %65, %68 : vector<8x8xf32>
    %70 = math.exp %69 : vector<8x8xf32>
    %cst_26 = arith.constant dense<0.000000e+00> : vector<8xf32>
    %71 = vector.multi_reduction <add>, %70, %cst_26 [1] : vector<8x8xf32> to vector<8xf32>
    %72 = vector.shape_cast %71 : vector<8xf32> to vector<8x1xf32>
    %73 = tpu.reciprocal %72 {approx = true} : vector<8x1xf32> -> vector<8x1xf32>
    %74 = vector.broadcast %73 : vector<8x1xf32> to vector<8x8xf32>
    %75 = arith.mulf %70, %74 : vector<8x8xf32>
    %76 = vector.extract_strided_slice %53 {offsets = [0, 64], sizes = [8, 16], strides = [1, 1]} : vector<8x128xf32> to vector<8x16xf32>
    %77 = arith.truncf %75 : vector<8x8xf32> to vector<8x8xbf16>
    %78 = arith.truncf %76 : vector<8x16xf32> to vector<8x16xbf16>
    %cst_27 = arith.constant dense<0.000000e+00> : vector<8x16xf32>
    %79 = tpu.matmul %77, %78, %cst_27 {dimension_numbers = #tpu.dot_dimension_numbers<[1], [0], [0], [1], [0, 0, 1, 1], [], []>} : vector<8x8xbf16>, vector<8x16xbf16>, vector<8x16xf32> -> vector<8x16xf32>
    %80 = vector.extract_strided_slice %26 {offsets = [0, 16], sizes = [8, 16], strides = [1, 1]} : vector<8x64xf32> to vector<8x16xf32>
    %81 = vector.extract_strided_slice %45 {offsets = [0, 4], sizes = [8, 4], strides = [1, 1]} : vector<8x20xf32> to vector<8x4xf32>
    %82 = vector.extract_strided_slice %48 {offsets = [0, 4], sizes = [8, 4], strides = [1, 1]} : vector<8x20xf32> to vector<8x4xf32>
    %83 = tpu.concatenate %80, %81, %82 in 1 : vector<8x16xf32>, vector<8x4xf32>, vector<8x4xf32> -> vector<8x24xf32>
    %84 = vector.extract_strided_slice %53 {offsets = [0, 16], sizes = [8, 16], strides = [1, 1]} : vector<8x128xf32> to vector<8x16xf32>
    %85 = tpu.concatenate %84, %49, %50 in 1 : vector<8x16xf32>, vector<8x4xf32>, vector<8x4xf32> -> vector<8x24xf32>
    %86 = arith.truncf %83 : vector<8x24xf32> to vector<8x24xbf16>
    %87 = arith.truncf %85 : vector<8x24xf32> to vector<8x24xbf16>
    %cst_28 = arith.constant dense<0.000000e+00> : vector<8x8xf32>
    %88 = tpu.matmul %86, %87, %cst_28 {dimension_numbers = #tpu.dot_dimension_numbers<[1], [1], [0], [0], [0, 0, 1, 0], [], []>} : vector<8x24xbf16>, vector<8x24xbf16>, vector<8x8xf32> -> vector<8x8xf32>
    %cst_29 = arith.constant 0.204124153 : f32
    %89 = vector.broadcast %cst_29 : f32 to vector<8x8xf32>
    %90 = arith.mulf %88, %89 : vector<8x8xf32>
    %91 = arith.addf %90, %9 : vector<8x8xf32>
    %cst_30 = arith.constant dense<0xFF800000> : vector<8xf32>
    %92 = vector.multi_reduction <maximumf>, %91, %cst_30 [1] : vector<8x8xf32> to vector<8xf32>
    %93 = vector.shape_cast %92 : vector<8xf32> to vector<8x1xf32>
    %94 = vector.broadcast %93 : vector<8x1xf32> to vector<8x8xf32>
    %95 = arith.subf %91, %94 : vector<8x8xf32>
    %96 = math.exp %95 : vector<8x8xf32>
    %cst_31 = arith.constant dense<0.000000e+00> : vector<8xf32>
    %97 = vector.multi_reduction <add>, %96, %cst_31 [1] : vector<8x8xf32> to vector<8xf32>
    %98 = vector.shape_cast %97 : vector<8xf32> to vector<8x1xf32>
    %99 = tpu.reciprocal %98 {approx = true} : vector<8x1xf32> -> vector<8x1xf32>
    %100 = vector.broadcast %99 : vector<8x1xf32> to vector<8x8xf32>
    %101 = arith.mulf %96, %100 : vector<8x8xf32>
    %102 = vector.extract_strided_slice %53 {offsets = [0, 80], sizes = [8, 16], strides = [1, 1]} : vector<8x128xf32> to vector<8x16xf32>
    %103 = arith.truncf %101 : vector<8x8xf32> to vector<8x8xbf16>
    %104 = arith.truncf %102 : vector<8x16xf32> to vector<8x16xbf16>
    %cst_32 = arith.constant dense<0.000000e+00> : vector<8x16xf32>
    %105 = tpu.matmul %103, %104, %cst_32 {dimension_numbers = #tpu.dot_dimension_numbers<[1], [0], [0], [1], [0, 0, 1, 1], [], []>} : vector<8x8xbf16>, vector<8x16xbf16>, vector<8x16xf32> -> vector<8x16xf32>
    %106 = vector.extract_strided_slice %26 {offsets = [0, 32], sizes = [8, 16], strides = [1, 1]} : vector<8x64xf32> to vector<8x16xf32>
    %107 = vector.extract_strided_slice %45 {offsets = [0, 8], sizes = [8, 4], strides = [1, 1]} : vector<8x20xf32> to vector<8x4xf32>
    %108 = vector.extract_strided_slice %48 {offsets = [0, 8], sizes = [8, 4], strides = [1, 1]} : vector<8x20xf32> to vector<8x4xf32>
    %109 = tpu.concatenate %106, %107, %108 in 1 : vector<8x16xf32>, vector<8x4xf32>, vector<8x4xf32> -> vector<8x24xf32>
    %110 = vector.extract_strided_slice %53 {offsets = [0, 32], sizes = [8, 16], strides = [1, 1]} : vector<8x128xf32> to vector<8x16xf32>
    %111 = tpu.concatenate %110, %49, %50 in 1 : vector<8x16xf32>, vector<8x4xf32>, vector<8x4xf32> -> vector<8x24xf32>
    %112 = arith.truncf %109 : vector<8x24xf32> to vector<8x24xbf16>
    %113 = arith.truncf %111 : vector<8x24xf32> to vector<8x24xbf16>
    %cst_33 = arith.constant dense<0.000000e+00> : vector<8x8xf32>
    %114 = tpu.matmul %112, %113, %cst_33 {dimension_numbers = #tpu.dot_dimension_numbers<[1], [1], [0], [0], [0, 0, 1, 0], [], []>} : vector<8x24xbf16>, vector<8x24xbf16>, vector<8x8xf32> -> vector<8x8xf32>
    %cst_34 = arith.constant 0.204124153 : f32
    %115 = vector.broadcast %cst_34 : f32 to vector<8x8xf32>
    %116 = arith.mulf %114, %115 : vector<8x8xf32>
    %117 = arith.addf %116, %9 : vector<8x8xf32>
    %cst_35 = arith.constant dense<0xFF800000> : vector<8xf32>
    %118 = vector.multi_reduction <maximumf>, %117, %cst_35 [1] : vector<8x8xf32> to vector<8xf32>
    %119 = vector.shape_cast %118 : vector<8xf32> to vector<8x1xf32>
    %120 = vector.broadcast %119 : vector<8x1xf32> to vector<8x8xf32>
    %121 = arith.subf %117, %120 : vector<8x8xf32>
    %122 = math.exp %121 : vector<8x8xf32>
    %cst_36 = arith.constant dense<0.000000e+00> : vector<8xf32>
    %123 = vector.multi_reduction <add>, %122, %cst_36 [1] : vector<8x8xf32> to vector<8xf32>
    %124 = vector.shape_cast %123 : vector<8xf32> to vector<8x1xf32>
    %125 = tpu.reciprocal %124 {approx = true} : vector<8x1xf32> -> vector<8x1xf32>
    %126 = vector.broadcast %125 : vector<8x1xf32> to vector<8x8xf32>
    %127 = arith.mulf %122, %126 : vector<8x8xf32>
    %128 = vector.extract_strided_slice %53 {offsets = [0, 96], sizes = [8, 16], strides = [1, 1]} : vector<8x128xf32> to vector<8x16xf32>
    %129 = arith.truncf %127 : vector<8x8xf32> to vector<8x8xbf16>
    %130 = arith.truncf %128 : vector<8x16xf32> to vector<8x16xbf16>
    %cst_37 = arith.constant dense<0.000000e+00> : vector<8x16xf32>
    %131 = tpu.matmul %129, %130, %cst_37 {dimension_numbers = #tpu.dot_dimension_numbers<[1], [0], [0], [1], [0, 0, 1, 1], [], []>} : vector<8x8xbf16>, vector<8x16xbf16>, vector<8x16xf32> -> vector<8x16xf32>
    %132 = vector.extract_strided_slice %26 {offsets = [0, 48], sizes = [8, 16], strides = [1, 1]} : vector<8x64xf32> to vector<8x16xf32>
    %133 = vector.extract_strided_slice %45 {offsets = [0, 12], sizes = [8, 4], strides = [1, 1]} : vector<8x20xf32> to vector<8x4xf32>
    %134 = vector.extract_strided_slice %48 {offsets = [0, 12], sizes = [8, 4], strides = [1, 1]} : vector<8x20xf32> to vector<8x4xf32>
    %135 = tpu.concatenate %132, %133, %134 in 1 : vector<8x16xf32>, vector<8x4xf32>, vector<8x4xf32> -> vector<8x24xf32>
    %136 = vector.extract_strided_slice %53 {offsets = [0, 48], sizes = [8, 16], strides = [1, 1]} : vector<8x128xf32> to vector<8x16xf32>
    %137 = tpu.concatenate %136, %49, %50 in 1 : vector<8x16xf32>, vector<8x4xf32>, vector<8x4xf32> -> vector<8x24xf32>
    %138 = arith.truncf %135 : vector<8x24xf32> to vector<8x24xbf16>
    %139 = arith.truncf %137 : vector<8x24xf32> to vector<8x24xbf16>
    %cst_38 = arith.constant dense<0.000000e+00> : vector<8x8xf32>
    %140 = tpu.matmul %138, %139, %cst_38 {dimension_numbers = #tpu.dot_dimension_numbers<[1], [1], [0], [0], [0, 0, 1, 0], [], []>} : vector<8x24xbf16>, vector<8x24xbf16>, vector<8x8xf32> -> vector<8x8xf32>
    %cst_39 = arith.constant 0.204124153 : f32
    %141 = vector.broadcast %cst_39 : f32 to vector<8x8xf32>
    %142 = arith.mulf %140, %141 : vector<8x8xf32>
    %143 = arith.addf %142, %9 : vector<8x8xf32>
    %cst_40 = arith.constant dense<0xFF800000> : vector<8xf32>
    %144 = vector.multi_reduction <maximumf>, %143, %cst_40 [1] : vector<8x8xf32> to vector<8xf32>
    %145 = vector.shape_cast %144 : vector<8xf32> to vector<8x1xf32>
    %146 = vector.broadcast %145 : vector<8x1xf32> to vector<8x8xf32>
    %147 = arith.subf %143, %146 : vector<8x8xf32>
    %148 = math.exp %147 : vector<8x8xf32>
    %cst_41 = arith.constant dense<0.000000e+00> : vector<8xf32>
    %149 = vector.multi_reduction <add>, %148, %cst_41 [1] : vector<8x8xf32> to vector<8xf32>
    %150 = vector.shape_cast %149 : vector<8xf32> to vector<8x1xf32>
    %151 = tpu.reciprocal %150 {approx = true} : vector<8x1xf32> -> vector<8x1xf32>
    %152 = vector.broadcast %151 : vector<8x1xf32> to vector<8x8xf32>
    %153 = arith.mulf %148, %152 : vector<8x8xf32>
    %154 = vector.extract_strided_slice %53 {offsets = [0, 112], sizes = [8, 16], strides = [1, 1]} : vector<8x128xf32> to vector<8x16xf32>
    %155 = arith.truncf %153 : vector<8x8xf32> to vector<8x8xbf16>
    %156 = arith.truncf %154 : vector<8x16xf32> to vector<8x16xbf16>
    %cst_42 = arith.constant dense<0.000000e+00> : vector<8x16xf32>
    %157 = tpu.matmul %155, %156, %cst_42 {dimension_numbers = #tpu.dot_dimension_numbers<[1], [0], [0], [1], [0, 0, 1, 1], [], []>} : vector<8x8xbf16>, vector<8x16xbf16>, vector<8x16xf32> -> vector<8x16xf32>
    %158 = tpu.concatenate %79, %105, %131, %157 in 1 : vector<8x16xf32>, vector<8x16xf32>, vector<8x16xf32>, vector<8x16xf32> -> vector<8x64xf32>
    %159 = arith.truncf %158 : vector<8x64xf32> to vector<8x64xbf16>
    %c0_43 = arith.constant 0 : index
    %c0_44 = arith.constant 0 : index
    %160 = vector.load %arg8[%c0_43, %c0_44] : memref<64x64xbf16, #tpu.memory_space<vmem>>, vector<64x64xbf16>
    %cst_45 = arith.constant dense<0.000000e+00> : vector<8x64xf32>
    %161 = tpu.matmul %159, %160, %cst_45 {dimension_numbers = #tpu.dot_dimension_numbers<[1], [0], [0], [1], [0, 0, 1, 1], [], []>} : vector<8x64xbf16>, vector<64x64xbf16>, vector<8x64xf32> -> vector<8x64xf32>
    %162 = arith.addf %1, %161 : vector<8x64xf32>
    %c0_46 = arith.constant 0 : index
    %c0_47 = arith.constant 0 : index
    %163 = vector.load %arg9[%c0_46, %c0_47] : memref<1x64xf32, #tpu.memory_space<vmem>>, vector<1x64xf32>
    %164 = arith.mulf %162, %162 : vector<8x64xf32>
    %cst_48 = arith.constant dense<0.000000e+00> : vector<8xf32>
    %165 = vector.multi_reduction <add>, %164, %cst_48 [1] : vector<8x64xf32> to vector<8xf32>
    %166 = vector.shape_cast %165 : vector<8xf32> to vector<8x1xf32>
    %cst_49 = arith.constant 6.400000e+01 : f32
    %167 = vector.broadcast %cst_49 : f32 to vector<8x1xf32>
    %168 = arith.divf %166, %167 : vector<8x1xf32>
    %cst_50 = arith.constant 9.99999997E-7 : f32
    %169 = vector.broadcast %cst_50 : f32 to vector<8x1xf32>
    %170 = arith.addf %168, %169 : vector<8x1xf32>
    %171 = math.rsqrt %170 : vector<8x1xf32>
    %172 = vector.broadcast %171 : vector<8x1xf32> to vector<8x64xf32>
    %173 = arith.mulf %162, %172 : vector<8x64xf32>
    %174 = vector.broadcast %163 : vector<1x64xf32> to vector<8x64xf32>
    %175 = arith.mulf %173, %174 : vector<8x64xf32>
    %176 = arith.truncf %175 : vector<8x64xf32> to vector<8x64xbf16>
    %c0_51 = arith.constant 0 : index
    %c0_52 = arith.constant 0 : index
    %177 = vector.load %arg10[%c0_51, %c0_52] : memref<64x256xbf16, #tpu.memory_space<vmem>>, vector<64x256xbf16>
    %cst_53 = arith.constant dense<0.000000e+00> : vector<8x256xf32>
    %178 = tpu.matmul %176, %177, %cst_53 {dimension_numbers = #tpu.dot_dimension_numbers<[1], [0], [0], [1], [0, 0, 1, 1], [], []>} : vector<8x64xbf16>, vector<64x256xbf16>, vector<8x256xf32> -> vector<8x256xf32>
    %179 = vector.extract_strided_slice %178 {offsets = [0, 0], sizes = [8, 128], strides = [1, 1]} : vector<8x256xf32> to vector<8x128xf32>
    %180 = vector.extract_strided_slice %178 {offsets = [0, 128], sizes = [8, 128], strides = [1, 1]} : vector<8x256xf32> to vector<8x128xf32>
    %cst_54 = arith.constant 0.000000e+00 : f32
    %181 = vector.broadcast %cst_54 : f32 to vector<8x128xf32>
    %182 = arith.subf %181, %179 : vector<8x128xf32>
    %183 = math.exp %182 : vector<8x128xf32>
    %cst_55 = arith.constant 1.000000e+00 : f32
    %184 = vector.broadcast %cst_55 : f32 to vector<8x128xf32>
    %185 = arith.addf %184, %183 : vector<8x128xf32>
    %cst_56 = arith.constant 1.000000e+00 : f32
    %186 = vector.broadcast %cst_56 : f32 to vector<8x128xf32>
    %187 = arith.divf %186, %185 : vector<8x128xf32>
    %188 = arith.mulf %179, %187 : vector<8x128xf32>
    %189 = arith.mulf %188, %180 : vector<8x128xf32>
    %190 = arith.truncf %189 : vector<8x128xf32> to vector<8x128xbf16>
    %c0_57 = arith.constant 0 : index
    %c0_58 = arith.constant 0 : index
    %191 = vector.load %arg11[%c0_57, %c0_58] : memref<128x64xbf16, #tpu.memory_space<vmem>>, vector<128x64xbf16>
    %cst_59 = arith.constant dense<0.000000e+00> : vector<8x64xf32>
    %192 = tpu.matmul %190, %191, %cst_59 {dimension_numbers = #tpu.dot_dimension_numbers<[1], [0], [0], [1], [0, 0, 1, 1], [], []>} : vector<8x128xbf16>, vector<128x64xbf16>, vector<8x64xf32> -> vector<8x64xf32>
    %193 = arith.addf %162, %192 : vector<8x64xf32>
    %c0_60 = arith.constant 0 : index
    %c0_61 = arith.constant 0 : index
    %c0_62 = arith.constant 0 : index
    %194 = vector.load %arg12[%c0_60, %c0_61, %c0_62] : memref<1x8x64xf32, #tpu.memory_space<vmem>>, vector<1x8x64xf32>
    %195 = vector.shape_cast %194 : vector<1x8x64xf32> to vector<8x64xf32>
    %196 = vector.shape_cast %193 : vector<8x64xf32> to vector<1x8x64xf32>
    tpu.vector_store %arg12[%c0_60, %c0_61, %c0_62], %196 {strides = array<i32>} : memref<1x8x64xf32, #tpu.memory_space<vmem>>, vector<1x8x64xf32>,
    return
  }
  func.func @transform_0(%arg0: i32) -> (i32, i32, i32) {
    %c0_i32 = arith.constant 0 : i32
    %c0_i32_0 = arith.constant 0 : i32
    %c0_i32_1 = arith.constant 0 : i32
    return %arg0, %c0_i32, %c0_i32_0 : i32, i32, i32
  }
  func.func @transform_1(%arg0: i32) -> (i32, i32) {
    %c0_i32 = arith.constant 0 : i32
    %c0_i32_0 = arith.constant 0 : i32
    %c0_i32_1 = arith.constant 0 : i32
    return %c0_i32, %c0_i32_0 : i32, i32
  }
  func.func @transform_2(%arg0: i32) -> (i32, i32) {
    %c0_i32 = arith.constant 0 : i32
    %c0_i32_0 = arith.constant 0 : i32
    %c0_i32_1 = arith.constant 0 : i32
    return %c0_i32, %c0_i32_0 : i32, i32
  }
  func.func @transform_3(%arg0: i32) -> (i32, i32) {
    %c0_i32 = arith.constant 0 : i32
    %c0_i32_0 = arith.constant 0 : i32
    %c0_i32_1 = arith.constant 0 : i32
    return %c0_i32, %c0_i32_0 : i32, i32
  }
  func.func @transform_4(%arg0: i32) -> (i32, i32) {
    %c0_i32 = arith.constant 0 : i32
    %c0_i32_0 = arith.constant 0 : i32
    %c0_i32_1 = arith.constant 0 : i32
    return %c0_i32, %c0_i32_0 : i32, i32
  }
  func.func @transform_5(%arg0: i32) -> (i32, i32) {
    %c0_i32 = arith.constant 0 : i32
    %c0_i32_0 = arith.constant 0 : i32
    %c0_i32_1 = arith.constant 0 : i32
    return %c0_i32, %c0_i32_0 : i32, i32
  }
  func.func @transform_6(%arg0: i32) -> (i32, i32) {
    %c0_i32 = arith.constant 0 : i32
    %c0_i32_0 = arith.constant 0 : i32
    %c0_i32_1 = arith.constant 0 : i32
    return %c0_i32, %c0_i32_0 : i32, i32
  }
  func.func @transform_7(%arg0: i32) -> (i32, i32) {
    %c0_i32 = arith.constant 0 : i32
    %c0_i32_0 = arith.constant 0 : i32
    %c0_i32_1 = arith.constant 0 : i32
    return %c0_i32, %c0_i32_0 : i32, i32
  }
  func.func @transform_8(%arg0: i32) -> (i32, i32) {
    %c0_i32 = arith.constant 0 : i32
    %c0_i32_0 = arith.constant 0 : i32
    %c0_i32_1 = arith.constant 0 : i32
    return %c0_i32, %c0_i32_0 : i32, i32
  }
  func.func @transform_9(%arg0: i32) -> (i32, i32) {
    %c0_i32 = arith.constant 0 : i32
    %c0_i32_0 = arith.constant 0 : i32
    %c0_i32_1 = arith.constant 0 : i32
    return %c0_i32, %c0_i32_0 : i32, i32
  }
  func.func @transform_10(%arg0: i32) -> (i32, i32) {
    %c0_i32 = arith.constant 0 : i32
    %c0_i32_0 = arith.constant 0 : i32
    %c0_i32_1 = arith.constant 0 : i32
    return %c0_i32, %c0_i32_0 : i32, i32
  }
  func.func @transform_11(%arg0: i32) -> (i32, i32, i32) {
    %c0_i32 = arith.constant 0 : i32
    %c0_i32_0 = arith.constant 0 : i32
    %c0_i32_1 = arith.constant 0 : i32
    return %arg0, %c0_i32, %c0_i32_0 : i32, i32, i32
  }
}

</mosaic_0001>

<bundles_post_ra>
// kernel: tpu_custom_call.1
= control target key start
LH: loop header
LB: loop body
LE: loop exit
PB: predicated region body
PF: predicated region fallthrough
CT: control target
= control target key end

     0   :  { %s2916_s0 = inlined_call_operand.hbm [shape: f32[2,8,64], index: 0, kind: input, shape index: {}]   ;;  %s2917_s1 = inlined_call_operand.hbm [shape: f32[8,20], index: 1, kind: input, shape index: {}]   ;;  %s2918_s2 = inlined_call_operand.hbm [shape: f32[8,20], index: 2, kind: input, shape index: {}]   ;;  %s2919_s3 = inlined_call_operand.vmem [shape: f32[1,64], index: 3, kind: input, shape index: {}]   ;;  %s2920_s4 = inlined_call_operand.vmem [shape: bf16[64,136], index: 4, kind: input, shape index: {}]   ;;  %s2921_s5 = inlined_call_operand.vmem [shape: f32[1,32], index: 5, kind: input, shape index: {}]   ;;  %s2922_s6 = inlined_call_operand.hbm [shape: bf16[32,128], index: 6, kind: input, shape index: {}]   ;;  %s2923_s7 = inlined_call_operand.hbm [shape: bf16[64,64], index: 7, kind: input, shape index: {}]   ;;  %s2924_s8 = inlined_call_operand.hbm [shape: f32[1,64], index: 8, kind: input, shape index: {}]   ;;  %s2925_s9 = inlined_call_operand.vmem [shape: bf16[64,256], index: 9, kind: input, shape index: {}]   ;;  %s2926_s10 = inlined_call_operand.vmem [shape: bf16[128,64], index: 10, kind: input, shape index: {}]   ;;  %s2927_s11 = inlined_call_operand.hbm [shape: f32[2,8,64], index: 11, kind: output, shape index: {}]  }
   0x1   :  { %2935 = sst [smem:[#allocation19_spill]] %s2917_s1 }
   0x2   :  { %2936 = sst [smem:[#allocation20_spill]] %s2918_s2 }
   0x3   :  { %2937 = sst [smem:[#allocation21_spill]] %s2927_s11 }
   0x4   :  { %16 = vsyncpa [#allocation3], 0 }
   0x5   :  { %18 = vsyncpa [#allocation3 + $0x1], 0 }
   0x6   :  { %19 = vsyncpa [#allocation6], 0 }
   0x7   :  { %20 = vsyncpa [#allocation9], 0 }
   0x8   :  { %21 = vsyncpa [#allocation12], 0 }
   0x9   :  { %22 = vsyncpa [#allocation4], 0 }
   0xa   :  { %24 = vsyncpa [#allocation4 + $0x1], 0  ;;  %s2386_s17 = smov 0   ;;  %s2388_s18 = smov 0  }
   0xb   :  { %s2390_s19 = smov 0   ;;  %s2392_s20 = smov 0  }
   0xc LB: > { %s2298_s21 = smov [#allocation5]   ;;  %s2407_s23 = sadd.s32 4294967295, %s2296_s20   ;;  %s2296_s20 = sphi %s2392_s20, %s2965_s20   ;;  %s2292_s19 = sphi %s2390_s19, %s2964_s19   ;;  %s2288_s18 = sphi %s2388_s18, %s2963_s18   ;;  %s2284_s17 = sphi %s2386_s17, %s2962_s17  }
   0xd   : > { %s310_s22 = sshll.u32 %s2298_s21, 4  ;;  %p1679_p0 = scmp.ge.s32.totalorder %s2296_s20, 1  ;;  %s311_s22 = int_to_ptr.vmem [resolvable:$true] %s310_s22 }
   0xe   : > { %p2928_p1 = scmp.eq.s32.totalorder %s2407_s23, 0  ;;  %p297_p2 = scmp.lt.s32.totalorder %s2296_s20, 3 }
   0xf   : > { %s2299_s25 = smov [#allocation8]   ;;  %s2300_s28 = smov [#allocation7]  }
  0x10   : > { %p2412_p3 = pnand %p1679_p0, %p297_p2  ;;  %s340_s26 = sshll.u32 %s2299_s25, 4  ;;  %s2419_s26 = int_to_ptr.vmem [resolvable:$true] %s340_s26 }
  0x11   : > { %s321_s29 = sshll.u32 %s2300_s28, 4  ;;  %s2940_s1 = sld [smem:[#allocation19_spill]]  ;;  %s2427_s29 = int_to_ptr.vmem [resolvable:$true] %s321_s29 }
  0x12   : > { %s2938_s24 = scalar_select %p2412_p3, 1, 0 }
  0x13   : > { %p1890_p5 = pneg %p2412_p3 }
  0x15   : > { %p2423_p6 = pnand %p1890_p5, %p2928_p1 }
  0x17   : > { %s2048_s13 = scalar_lea.hbm %s2940_s1, 128  ;;  %p2437_p8 = pneg %p2423_p6 }
  0x18   : > { %p2049_p7 = scmp.ne.s32.totalorder %s2940_s1, %s2048_s13  ;;  %p2055_p11 = scmp.lt.u32.totalorder %s2048_s13, %s2940_s1 }
  0x1a   : > { %p2051_p9 = pnand %p2437_p8, %p2049_p7 }
  0x1c   : > { %p2052_p10 = pneg %p2051_p9 }
  0x1e   : > { %p2057_p12 = pnand %p2055_p11, %p2052_p10 }
  0x20   : > { %2060 = shalt.err (!%p2057_p12)
}
  0x21   : > { %s2061_s28 = scalar_lea.vmem %s311_s22, 128  ;;  %p2069_p5 = scmp.lt.s32.totalorder %s311_s22, %s311_s22 }
  0x22   : > { %p2062_p13 = scmp.ne.s32.totalorder %s311_s22, %s2061_s28  ;;  %p2070_p4 = scmp.lt.s32.totalorder %s2061_s28, %s2061_s28 }
  0x24   : > { %p2064_p0 = pnand %p2062_p13, %p2437_p8  ;;  %p2071_p1 = por %p2070_p4, %p2069_p5 }
  0x26   : > { %p2065_p2 = pneg %p2064_p0 }
  0x28   : > { %p2072_p3 = pnand %p2071_p1, %p2065_p2 }
  0x2a   : > { %2075 = shalt.err (!%p2072_p3)
}
  0x2b   : > { %1893 = dma.hbm_to_vmem [thread:$0]  (!%p2423_p6), %s2940_s1, 128, %s311_s22, [#allocation6]  }
  0x2c   : > { %s2076_s15 = scalar_lea.hbm %s2922_s6, 256 }
  0x2d   : > { %p2077_p7 = scmp.ne.s32.totalorder %s2922_s6, %s2076_s15  ;;  %p2083_p1 = scmp.lt.u32.totalorder %s2076_s15, %s2922_s6 }
  0x2f   : > { %p2079_p9 = pnand %p2077_p7, %p2437_p8 }
  0x31   : > { %p2080_p4 = pneg %p2079_p9 }
  0x33   : > { %p2085_p3 = pnand %p2083_p1, %p2080_p4 }
  0x35   : > { %2088 = shalt.err (!%p2085_p3)
}
  0x36   : > { %s2089_s22 = scalar_lea.vmem %s2419_s26, 256  ;;  %p2097_p13 = scmp.lt.s32.totalorder %s2419_s26, %s2419_s26 }
  0x37   : > { %p2090_p10 = scmp.ne.s32.totalorder %s2419_s26, %s2089_s22  ;;  %p2098_p0 = scmp.lt.s32.totalorder %s2089_s22, %s2089_s22 }
  0x39   : > { %p2092_p11 = pnand %p2090_p10, %p2437_p8  ;;  %p2099_p2 = por %p2098_p0, %p2097_p13 }
  0x3b   : > { %p2093_p12 = pneg %p2092_p11 }
  0x3d   : > { %p2100_p5 = pnand %p2099_p2, %p2093_p12 }
  0x3f   : > { %2103 = shalt.err (!%p2100_p5)
}
  0x40   : > { %s2931_s30 = smov 64   ;;  %s2932_s11 = smov 4  }
  0x41   : > { %1899 = dma.hbm_to_vmem [thread:$0]  (!%p2423_p6), %s2922_s6, 256, %s2419_s26, [#allocation9], %s2931_s30, %s2931_s30, %s2932_s11  }
  0x42   : > { %s2942_s2 = sld [smem:[#allocation20_spill]] }
  0x48   : > { %s2104_s21 = scalar_lea.hbm %s2942_s2, 128 }
  0x49   : > { %p2105_p7 = scmp.ne.s32.totalorder %s2942_s2, %s2104_s21  ;;  %p2111_p1 = scmp.lt.u32.totalorder %s2104_s21, %s2942_s2 }
  0x4b   : > { %p2107_p9 = pnand %p2105_p7, %p2437_p8 }
  0x4d   : > { %p2108_p4 = pneg %p2107_p9 }
  0x4f   : > { %p2113_p3 = pnand %p2111_p1, %p2108_p4 }
  0x51   : > { %2116 = shalt.err (!%p2113_p3)
}
  0x52   : > { %s2117_s26 = scalar_lea.vmem %s2427_s29, 128  ;;  %p2125_p13 = scmp.lt.s32.totalorder %s2427_s29, %s2427_s29 }
  0x53   : > { %p2118_p10 = scmp.ne.s32.totalorder %s2427_s29, %s2117_s26  ;;  %p2126_p0 = scmp.lt.s32.totalorder %s2117_s26, %s2117_s26 }
  0x55   : > { %p2120_p11 = pnand %p2118_p10, %p2437_p8  ;;  %p2127_p2 = por %p2126_p0, %p2125_p13 }
  0x57   : > { %p2121_p12 = pneg %p2120_p11 }
  0x59   : > { %p2128_p5 = pnand %p2127_p2, %p2121_p12 }
  0x5b   : > { %2131 = shalt.err (!%p2128_p5)
}
  0x5c   : > { %1896 = dma.hbm_to_vmem [thread:$0]  (!%p2423_p6), %s2942_s2, 128, %s2427_s29, [#allocation6]  }
  0x5d   : > { %s2303_s13 = smov [#allocation10]   ;;  %s2304_s15 = smov [#allocation11]  }
  0x5e   : > { %s353_s14 = sshll.u32 %s2303_s13, 4  ;;  %s367_s21 = sshll.u32 %s2304_s15, 4  ;;  %s354_s14 = int_to_ptr.vmem [resolvable:$true] %s353_s14  ;;  %s368_s21 = int_to_ptr.vmem [resolvable:$true] %s367_s21 }
  0x5f   : > { %s2132_s22 = scalar_lea.hbm %s2923_s7, 512 }
  0x60   : > { %p2133_p7 = scmp.ne.s32.totalorder %s2923_s7, %s2132_s22  ;;  %p2139_p1 = scmp.lt.u32.totalorder %s2132_s22, %s2923_s7 }
  0x62   : > { %p2135_p9 = pnand %p2133_p7, %p2437_p8 }
  0x64   : > { %p2136_p4 = pneg %p2135_p9 }
  0x66   : > { %p2141_p3 = pnand %p2139_p1, %p2136_p4 }
  0x68   : > { %2144 = shalt.err (!%p2141_p3)
}
  0x69   : > { %s2145_s29 = scalar_lea.vmem %s354_s14, 512  ;;  %p2153_p13 = scmp.lt.s32.totalorder %s354_s14, %s354_s14 }
  0x6a   : > { %p2146_p10 = scmp.ne.s32.totalorder %s354_s14, %s2145_s29  ;;  %p2154_p0 = scmp.lt.s32.totalorder %s2145_s29, %s2145_s29 }
  0x6c   : > { %p2148_p11 = pnand %p2146_p10, %p2437_p8  ;;  %p2155_p2 = por %p2154_p0, %p2153_p13 }
  0x6e   : > { %p2149_p12 = pneg %p2148_p11 }
  0x70   : > { %p2156_p5 = pnand %p2155_p2, %p2149_p12 }
  0x72   : > { %2159 = shalt.err (!%p2156_p5)
}
  0x73   : > { %s2943_s30 = smov 4   ;;  %s2944_s12 = smov 64  }
  0x74   : > { %1902 = dma.hbm_to_vmem [thread:$0]  (!%p2423_p6), %s2923_s7, 512, %s354_s14, [#allocation9], %s2944_s12, %s2944_s12, %s2943_s30  }
  0x75   : > { %s2160_s28 = scalar_lea.hbm %s2924_s8, 16 }
  0x76   : > { %p2161_p7 = scmp.ne.s32.totalorder %s2924_s8, %s2160_s28  ;;  %p2167_p1 = scmp.lt.u32.totalorder %s2160_s28, %s2924_s8 }
  0x78   : > { %p2163_p9 = pnand %p2161_p7, %p2437_p8 }
  0x7a   : > { %p2164_p4 = pneg %p2163_p9 }
  0x7c   : > { %p2169_p3 = pnand %p2167_p1, %p2164_p4 }
  0x7e   : > { %2172 = shalt.err (!%p2169_p3)
}
  0x7f   : > { %s2173_s11 = scalar_lea.vmem %s368_s21, 16  ;;  %s2180_s14 = scalar_lea.vmem %s368_s21, 32 }
  0x80   : > { %p2174_p10 = scmp.ne.s32.totalorder %s368_s21, %s2173_s11  ;;  %p2181_p13 = scmp.lt.s32.totalorder %s368_s21, %s368_s21 }
  0x81   : > { %p2182_p0 = scmp.lt.s32.totalorder %s2180_s14, %s2173_s11 }
  0x82   : > { %p2176_p11 = pnand %p2174_p10, %p2437_p8 }
  0x83   : > { %p2183_p2 = por %p2182_p0, %p2181_p13 }
  0x84   : > { %p2177_p12 = pneg %p2176_p11 }
  0x86   : > { %p2184_p5 = pnand %p2183_p2, %p2177_p12 }
  0x88   : > { %2187 = shalt.err (!%p2184_p5)
}
  0x89   : > { %1905 = dma.hbm_to_vmem [thread:$0]  (!%p2423_p6), %s2924_s8, 16, %s368_s21, [#allocation12]  }
  0x8a   : > { %s1678_s16 = sadd.s32 4294967294, %s2296_s20   ;;  %s2543_s27 = sadd.s32 1, %s2296_s20  }
  0x8b   : > { %s37_s13 = sadd.s32 1, %s2292_s19  ;;  %s34_s15 = ssub.s32 %s2296_s20, %s2543_s27 }
  0x8c   : > { %p44_p8 = scmp.ne.s32.totalorder %s2292_s19, %s2288_s18  ;;  %p35_p7 = scmp.eq.s32.totalorder %s34_s15, 0 }
  0x8d   : > { %p45_p9 = scmp.eq.s32.totalorder %s2296_s20, 0  ;;  %p50_p4 = scmp.ne.s32.totalorder %s2288_s18, %s2284_s17 }
  0x8e   : > { %p284_p1 = scmp.eq.s32.totalorder %s2407_s23, 1  ;;  %p2945_p10 = scmp.eq.s32.totalorder %s2407_s23, 0 }
  0x8f   : > { %s2555_s25 = scalar_select %p35_p7, %s2292_s19, %s37_s13  }
  0x90   : > { %p46_p3 = por %p45_p9, %p44_p8  ;;  %p2559_p11 = por %p2945_p10, %p50_p4 }
  0x91   : > { %p2563_p6 = por %p284_p1, %p44_p8  ;;  %p290_p12 = scmp.eq.s32.totalorder %s1678_s16, 1 }
  0x92   : > { %p1919_p13 = scmp.lt.s32.totalorder %s2296_s20, 2  ;;  %s384_s22 = sand.u32 1, %s2292_s19  }
  0x93   : > { %s2947_s21 = scalar_select %p2563_p6, 1, 0 }
  0x94   : > { %p2569_p0 = por %p290_p12, %p50_p4  ;;  %s1686_s1 = sshll.u32 %s384_s22, 3 }
  0x95   : > { %s1687_s29 = sshll.u32 %s2296_s20, 7  ;;  %s388_s12 = scalar_lea.vmem [#allocation2], %s1686_s1 }
  0x96   : > { %s2948_s26 = scalar_select %p2569_p0, 1, 0 }
  0x97   : > { %s2577_s30 = scalar_lea.hbm %s2916_s0, %s1687_s29  ;;  %s395_s13 = sshll.u32 %s388_s12, 4  ;;  %s2583_s13 = int_to_ptr.vmem [resolvable:$true] %s395_s13 }
  0x98   : > { %p2579_p2 = pnand %p1919_p13, %p46_p3  ;;  %s385_s15 = scalar_lea.sflag [#allocation3], %s384_s22 }
  0x99   : > { %s2188_s2 = scalar_lea.hbm %s2577_s30, 128  ;;  %s2193_s11 = scalar_lea.hbm %s2916_s0, 256 }
  0x9a   : > { %p2189_p5 = scmp.ne.s32.totalorder %s2577_s30, %s2188_s2  ;;  %p2190_p8 = pneg %p2579_p2 }
  0x9b   : > { %p2194_p4 = scmp.lt.u32.totalorder %s2577_s30, %s2916_s0  ;;  %p2195_p1 = scmp.lt.u32.totalorder %s2193_s11, %s2188_s2 }
  0x9c   : > { %p2191_p7 = pnand %p2190_p8, %p2189_p5  ;;  %p2197_p10 = scmp.lt.u32.totalorder %s2188_s2, %s2577_s30 }
  0x9d   : > { %p2196_p3 = por %p2195_p1, %p2194_p4 }
  0x9e   : > { %p2192_p9 = pneg %p2191_p7 }
  0x9f   : > { %p2198_p12 = por %p2197_p10, %p2196_p3 }
  0xa1   : > { %p2199_p13 = pnand %p2198_p12, %p2192_p9 }
  0xa3   : > { %2202 = shalt.err (!%p2199_p13)
}
  0xa4   : > { %s2203_s22 = scalar_lea.vmem %s2583_s13, 128  ;;  %s2305_s29 = smov [#allocation2]  }
  0xa5   : > { %p2204_p5 = scmp.ne.s32.totalorder %s2583_s13, %s2203_s22  ;;  %s2208_s1 = sshll.u32 %s2305_s29, 4  ;;  %s2209_s1 = int_to_ptr.vmem [resolvable:$false] %s2208_s1 }
  0xa6   : > { %s2210_s14 = scalar_lea.vmem %s2209_s1, 256  ;;  %p2211_p6 = scmp.lt.s32.totalorder %s2583_s13, %s2209_s1 }
  0xa7   : > { %p2206_p7 = pnand %p2204_p5, %p2190_p8  ;;  %p2212_p4 = scmp.lt.s32.totalorder %s2210_s14, %s2203_s22 }
  0xa9   : > { %p2207_p0 = pneg %p2206_p7  ;;  %p2213_p1 = por %p2212_p4, %p2211_p6 }
  0xab   : > { %p2214_p3 = pnand %p2213_p1, %p2207_p0 }
  0xad   : > { %2217 = shalt.err (!%p2214_p3)
}
  0xae   : > { %1909 = dma.hbm_to_vmem [thread:$0]  (!%p2579_p2), %s2577_s30, 128, %s2583_s13, %s385_s15  }
  0xaf   : > { %p2950_p9 = scmp.ne.s32.totalorder %s2938_s24, 0 }
  0xb0   : > { %s2613_s2 = sand.u32 (!%p2950_p9), 1, %s2288_s18  }
  0xb1   : > { %404 = sbr.rel (%p2950_p9) target bundleno = 3082 (0xc0a), region = 64  ;;  %s2934_s11 = sshll.u32 (!%p2950_p9), %s2613_s2, 3 }
  0xb2   : > { %s407_s12 = scalar_lea.sflag (!%p2950_p9), [#allocation3], %s2613_s2  ;;  %s410_s22 = scalar_lea.vmem (!%p2950_p9), [#allocation2], %s2934_s11 }
  0xb8   : > { %2263 = dma.done.wait (%p2559_p11), %s407_s12, 128  }
  0xb9   : > { %2265 = vsyncadd (%p2559_p11), %s407_s12, 4294967168  ;;  %p2951_p6 = scmp.eq.s32.totalorder %s2407_s23, 0 }
  0xbb   : > { %2267 = dma.done.wait (%p2951_p6), [#allocation6], 256   ;;  %p2952_p0 = pmov %p2951_p6 }
  0xbd   : > { %2269 = vsyncadd (%p2952_p0), [#allocation6], 4294967040  ;;  %p2953_p2 = pmov %p2952_p0 }
  0xbe   : > { %p2954_p8 = pmov %p2952_p0 }
  0xbf   : > { %2271 = dma.done.wait (%p2953_p2), [#allocation9], 768  }
  0xc0   : > { %2273 = vsyncadd (%p2954_p8), [#allocation9], 4294966528  ;;  %p2955_p10 = pmov %p2952_p0 }
  0xc1   : > { %p2956_p12 = pmov %p2952_p0 }
  0xc2   : > { %2275 = dma.done.wait (%p2955_p10), [#allocation12], 16  }
  0xc3   : > { %2277 = vsyncadd (%p2956_p12), [#allocation12], 4294967280  ;;  %v2635_v0 = vld [vmem:[%s410_s22] sm:$0xff]  ;;  %vm481_vm0 = vcmask 523264   ;;  %v1987_v5 = vld [vmem:[%s2920_s4 + $0x14] ss:$8 sps:$4 sm:$0xff]  }
  0xc4   : > { %v480_v1 = vmul.f32 %v2635_v0, %v2635_v0  ;;  %v1984_v3 = vld [vmem:[%s2920_s4 + $0x4] ss:$8 sps:$4 sm:$0xff]   ;;  %v1986_v4 = vld [vmem:[%s2920_s4] ss:$8 sps:$4 sm:$0xff]   ;;  %v1989_v6 = vld [vmem:[%s2920_s4 + $0x10] ss:$8 sps:$4 sm:$0xff]  }
  0xc5   : > { %549 = vmatprep.subr.bf16.mxu0 %v1984_v3  ;;  %v1990_v7 = vld [vmem:[%s2920_s4 + $0x24] ss:$8 sps:$4 sm:$0xff]   ;;  %v2306_v8 = vmov 0   ;;  %v1992_v9 = vld [vmem:[%s2920_s4 + $0x20] ss:$8 sps:$4 sm:$0xff]   ;;  %s2307_s1 = smov 64  }
  0xc6   : > { %v482_v2 = vsel %vm481_vm0, %v480_v1, 0.0  ;;  %550 = vmatpush1.bf16.msra.mxu0 %v1986_v4  ;;  %581 = vmatprep.mubr.bf16.mxu0 %v2306_v8  ;;  %v1993_v10 = vld [vmem:[%s2920_s4 + $0x34] ss:$8 sps:$4 sm:$0xff]   ;;  %v1995_v11 = vld [vmem:[%s2920_s4 + $0x30] ss:$8 sps:$4 sm:$0xff]   ;;  %s2308_s14 = smov 96  }
  0xc7   : > { %483 = vadd.xlane.f32.xlu0 %v482_v2  ;;  %551 = vmatprep.subr.bf16.mxu0 %v1987_v5  ;;  %v1696_v16 = vld [vmem:[%s2919_s3] ss:$0 sm:$0xff]  ;;  %v472_v25 = vld [vmem:[#allocation7] sm:$0xff]  ;;  %vm596_vm1 = vcmask 261120   ;;  %v2309_v30 = vmov 0.0   ;;  %vm2310_vm2 = vmmov 0  }
  0xc8   : > { %v1706_v28 = vld [vmem:[%s2921_s5] ss:$0 sm:$0xff]  ;;  %v1997_v31 = vld [vmem:[#allocation8 + $0x8] sm:$0xff]   ;;  %1786 = vmatprep.subr.bf16.mxu1 %v2309_v30  ;;  %1788 = vmatprep.mubr.msk.bf16.mxu1 %vm2310_vm2, %v2309_v30  ;;  %s2311_s24 = smov 116   ;;  %v471_v40 = vld [vmem:[#allocation5] sm:$0xff]  ;;  %s2312_s28 = smov 108  }
  0xc9   : > { %v1996_v29 = vld [vmem:[#allocation8] sm:$0xff]   ;;  %s2313_s30 = smov 20   ;;  %vm631_vm3 = vcmask 883712   ;;  %s2314_s13 = smov 32   ;;  %vm721_vm4 = vcmask 130048   ;;  %vm723_vm5 = vcmask 162816  }
  0xca   : > { %552 = vmatpush1.bf16.msra.mxu0 %v1989_v6  ;;  %s2315_s16 = smov 48   ;;  %s2316_s15 = smov 16   ;;  %vm736_vm6 = vcmask 195584   ;;  %vm785_vm8 = vcmask 64512   ;;  %vm805_vm9 = vcmask 1043456   ;;  %vm1243_vm10 = vcmask 392192  }
  0xcb   : > { %553 = vmatprep.subr.bf16.mxu0 %v1990_v7  ;;  %s2317_s29 = smov 44   ;;  %s2318_s12 = smov 28  }
  0xcc   : > { %s2319_s22 = smov 40   ;;  %s2322_s11 = smov 112  }
  0xcd   : > { %p2959_p13 = scmp.ne.s32.totalorder %s2947_s21, 0 }
  0xce   : > { %554 = vmatpush1.bf16.msra.mxu0 %v1992_v9 }
  0xcf   : > { %555 = vmatprep.subr.bf16.mxu0 %v1993_v10 }
  0xd2   : > { %556 = vmatpush1.bf16.msra.mxu0 %v1995_v11 }
  0xd3   : > { %1778 = vmatprep.subr.bf16.mxu0 %v2309_v30 }
 0x154   : > { %v484_v12 = vpop.xlane.xlu0 %483 }
 0x155   : > { %v486_v13 = vmul.f32 0.015625, %v484_v12 }
 0x157   : > { %v487_v14 = vadd.f32 1e-06, %v486_v13 }
 0x159   : > { %2022 = vrsqrt.f32 %v487_v14 }
 0x163   : > { %v2023_v15 = vpop.eup %2022 }
 0x164   : > { %v489_v17 = vmul.f32 %v2023_v15, %v2635_v0 }
 0x166   : > { %v496_v18 = vmul.f32 %v1696_v16, %v489_v17 }
 0x168   : > { %v497_v19 = vpack.c.bf16 %v496_v18, %v496_v18 }
 0x16a   : > { %1705 = vmatmul.mubr.msk.bf16.vlgmr.msra.gmra.mrb[0].mxu0 %vm481_vm0, %v497_v19 }
 0x16b   : > { %1782 = vmatprep.mubr.msk.bf16.mxu0 %vm2310_vm2, %v2309_v30  ;;  %1779 = vmatpush3.bf16.msra.mxu0 %v1996_v29 }
 0x16c   : > { %1780 = vmatprep.subr.bf16.mxu0 %v2309_v30 }
 0x16f   : > { %1781 = vmatpush3.bf16.msra.mxu0 %v1997_v31 }
 0x170   : > { %1792 = vmatprep.subr.bf16.mxu0 %v2309_v30 }
 0x23d   : > { %v2670_v20 = vpop.f32.mrb[0].mxu0 }
 0x23e   : > { %v2672_v21 = vpop.f32.mrb[1].mxu0  ;;  %v591_v22 = vmul.f32 %v2670_v20, %v2670_v20 }
 0x23f   : > { %v587_v23 = vpop.f32.mrb[2].mxu0 }
 0x240   : > { %593 = vrot.lane.b32.xlu0 %v591_v22, %s2307_s1  ;;  %v588_v24 = vpop.f32.mrb[3].mxu0 }
 0x244   : > { %640 = vrot.lane.b32.xlu0 %v472_v25, %s2308_s14 }
 0x2b2   : > { %v594_v26 = vpop.permute.xlu0 %593 }
 0x2b3   : > { %v597_v27 = vsel %vm596_vm1, %v594_v26, 0.0 }
 0x2b4   : > { %598 = vadd.xlane.f32.xlu1 %v597_v27 }
 0x2b6   : > { %v641_v45 = vpop.permute.xlu0 %640 }
 0x2b7   : > { %v643_v46 = vmul.f32 %v641_v45, %v2670_v20 }
 0x2c5   : > { %610 = vrot.lane.b32.xlu1 %v1706_v28, %s2307_s1 }
 0x341   : > { %v599_v32 = vpop.xlane.xlu1 %598 }
 0x342   : > { %v601_v33 = vmul.f32 0.03125, %v599_v32 }
 0x344   : > { %v602_v34 = vadd.f32 1e-06, %v601_v33 }
 0x345   : > { %v611_v36 = vpop.permute.xlu1 %610 }
 0x346   : > { %2024 = vrsqrt.f32 %v602_v34 }
 0x350   : > { %v2025_v35 = vpop.eup %2024 }
 0x351   : > { %v604_v37 = vmul.f32 %v2025_v35, %v2670_v20 }
 0x353   : > { %v613_v38 = vmul.f32 %v611_v36, %v604_v37 }
 0x355   : > { %v650_v39 = vpack.c.bf16 %v613_v38, %v613_v38 }
 0x357   : > { %656 = vrot.lane.b32.xlu1 %v650_v39, %s2307_s1 }
 0x35b   : > { %620 = vrot.lane.b32.xlu1 %v472_v25, %s2311_s24 }
 0x35f   : > { %615 = vrot.lane.b32.xlu1 %v471_v40, %s2308_s14 }
 0x3c9   : > { %v657_v41 = vpop.permute.xlu1 %656 }
 0x3ca   : > { %1783 = vmatmul.mubr.msk.bf16.vlgmr.msra.gmra.mrb[4].mxu0 %vm596_vm1, %v657_v41 }
 0x3cb   : > { %1794 = vmatprep.mubr.msk.bf16.mxu0 %vm2310_vm2, %v2309_v30 }
 0x3cd   : > { %v621_v42 = vpop.permute.xlu1 %620 }
 0x3ce   : > { %v623_v43 = vmul.f32 %v621_v42, %v2670_v20  ;;  %v624_v44 = vmul.f32 %v621_v42, %v2672_v21 }
 0x3d0   : > { %627 = vrot.lane.b32.xlu0 %v623_v43, %s2312_s28  ;;  %629 = vrot.lane.b32.xlu1 %v624_v44, %s2312_s28  ;;  %s2321_s28 = smov 36  }
 0x3d1   : > { %v616_v47 = vpop.permute.xlu1 %615 }
 0x3d2   : > { %v618_v48 = vmul.f32 %v616_v47, %v2670_v20 }
 0x3d4   : > { %635 = vrot.lane.b32.xlu0 %v471_v40, %s2311_s24  ;;  %645 = vrot.lane.b32.xlu1 %v643_v46, %s2313_s30  ;;  %s2320_s24 = smov 24   ;;  %v473_v46 = vlaneseq }
 0x3d6   : > { %v474_v47 = vshrl.u32 %v473_v46, 7 }
 0x442   : > { %v628_v49 = vpop.permute.xlu0 %627  ;;  %v630_v50 = vpop.permute.xlu1 %629 }
 0x443   : > { %v632_v51 = vsel %vm631_vm3, %v628_v49, %v630_v50  ;;  %v2324_v50 = vmov -1e+30  }
 0x444   : > { %v634_v52 = vsub.f32 %v618_v48, %v632_v51  ;;  %v476_v48 = vand.u32 127, %v473_v46 }
 0x446   : > { %v636_v53 = vpop.permute.xlu0 %635  ;;  %725 = vrot.lane.b32.xlu0 %v634_v52, %s2314_s13  ;;  %v646_v56 = vpop.permute.xlu1 %645  ;;  %vm477_vm7 = vcmp.le.s32.totalorder %v476_v48, %v474_v47 }
 0x447   : > { %v639_v54 = vmul.f32 %v636_v53, %v2672_v21  ;;  %v638_v55 = vmul.f32 %v636_v53, %v2670_v20  ;;  %v478_v51 = vsel %vm477_vm7, 0.0, %v2324_v50 }
 0x449   : > { %v649_v57 = vadd.f32 %v646_v56, %v639_v54  ;;  %v648_v58 = vadd.f32 %v646_v56, %v638_v55 }
 0x44a   : > { %714 = vrot.lane.b32.xlu0 %v634_v52, %s2315_s16 }
 0x44b   : > { %729 = vrot.lane.b32.xlu1 %v649_v57, %s2316_s15 }
 0x44e   : > { %718 = vrot.lane.b32.xlu0 %v648_v58, %s2314_s13 }
 0x452   : > { %853 = vrot.lane.b32.xlu0 %v634_v52, %s2317_s29  ;;  %s2323_s29 = smov 80  }
 0x456   : > { %856 = vrot.lane.b32.xlu0 %v648_v58, %s2318_s12 }
 0x45a   : > { %980 = vrot.lane.b32.xlu0 %v634_v52, %s2319_s22  ;;  %s1742_s22 = sshll.u32 %s2407_s23, 7  ;;  %s1547_s23 = scalar_lea.sflag [#allocation4], %s2613_s2 }
 0x45e   : > { %983 = vrot.lane.b32.xlu0 %v648_v58, %s2320_s24  ;;  %s2957_s24 = sshll.u32 %s2613_s2, 3 }
 0x462   : > { %1106 = vrot.lane.b32.xlu0 %v634_v52, %s2321_s28  ;;  %s468_s28 = scalar_lea.vmem [#allocation13], %s2957_s24 }
 0x49d   : > { %v2708_v59 = vpop.f32.mrb[4].mxu0 }
 0x49e   : > { %862 = vrot.lane.b32.xlu1 %v2708_v59, %s2322_s11  ;;  %v1784_v60 = vpop.f32.mrb[5].mxu0 }
 0x49f   : > { %v710_v61 = vpop.f32.mrb[6].mxu0 }
 0x4a0   : > { %v1785_v62 = vpop.f32.mrb[7].mxu0 }
 0x4a2   : > { %850 = vrot.lane.b32.xlu1 %v2670_v20, %s2322_s11 }
 0x4a6   : > { %988 = vrot.lane.b32.xlu1 %v2708_v59, %s2308_s14 }
 0x4aa   : > { %977 = vrot.lane.b32.xlu1 %v2670_v20, %s2308_s14  ;;  %s2958_s14 = sld [smem:[#allocation21_spill]] }
 0x4ae   : > { %1114 = vrot.lane.b32.xlu1 %v2708_v59, %s2323_s29 }
 0x4b2   : > { %1103 = vrot.lane.b32.xlu1 %v2670_v20, %s2323_s29  ;;  %s1560_s29 = sshll.u32 %s468_s28, 4  ;;  %s2873_s29 = int_to_ptr.vmem [resolvable:$true] %s1560_s29 }
 0x4b6   : > { %1109 = vrot.lane.b32.xlu1 %v649_v57, %s2313_s30  ;;  %s2871_s30 = scalar_lea.hbm %s2958_s14, %s1742_s22 }
 0x4b8   : > { %v726_v63 = vpop.permute.xlu0 %725 }
 0x4b9   : > { %v732_v3 = vsel %vm721_vm4, %v2708_v59, %v726_v63 }
 0x4bc   : > { %v715_v1 = vpop.permute.xlu0 %714 }
 0x4bd   : > { %v730_v2 = vpop.permute.xlu1 %729  ;;  %v722_v9 = vsel %vm721_vm4, %v2670_v20, %v715_v1 }
 0x4be   : > { %v733_v4 = vsel %vm723_vm5, %v732_v3, %v730_v2 }
 0x4bf   : > { %v735_v5 = vpack.c.bf16 %v733_v4, %v733_v4 }
 0x4c0   : > { %v719_v6 = vpop.permute.xlu0 %718 }
 0x4c1   : > { %v741_v7 = vsel %vm736_vm6, %v735_v5, 0  ;;  %v724_v10 = vsel %vm723_vm5, %v722_v9, %v719_v6 }
 0x4c2   : > { %1787 = vmatpush3.bf16.xpose.msra.mxu1 %v741_v7  ;;  %v734_v11 = vpack.c.bf16 %v724_v10, %v724_v10 }
 0x4c3   : > { %1798 = vmatprep.subr.bf16.mxu1 %v2309_v30 }
 0x4c4   : > { %v854_v12 = vpop.permute.xlu0 %853 }
 0x4c8   : > { %v857_v16 = vpop.permute.xlu0 %856 }
 0x4c9   : > { %1789 = vmatmul.mubr.msk.bf16.vlgmr.msra.gmra.mrb[0].mxu1 %vm736_vm6, %v734_v11 }
 0x4ca   : > { %1800 = vmatprep.mubr.msk.bf16.mxu1 %vm2310_vm2, %v2309_v30 }
 0x4cc   : > { %v981_v23 = vpop.permute.xlu0 %980 }
 0x4d0   : > { %v984_v32 = vpop.permute.xlu0 %983 }
 0x4d4   : > { %v1107_v41 = vpop.permute.xlu0 %1106 }
 0x510   : > { %v863_v13 = vpop.permute.xlu1 %862 }
 0x511   : > { %v865_v14 = vsel %vm721_vm4, %v863_v13, %v726_v63 }
 0x512   : > { %v866_v15 = vsel %vm723_vm5, %v865_v14, %v730_v2 }
 0x513   : > { %v868_v17 = vpack.c.bf16 %v866_v15, %v866_v15 }
 0x514   : > { %v851_v18 = vpop.permute.xlu1 %850 }
 0x515   : > { %v859_v19 = vsel %vm721_vm4, %v851_v18, %v854_v12  ;;  %v873_v20 = vsel %vm736_vm6, %v868_v17, 0 }
 0x516   : > { %1799 = vmatpush3.bf16.xpose.msra.mxu1 %v873_v20  ;;  %v860_v21 = vsel %vm723_vm5, %v859_v19, %v857_v16 }
 0x517   : > { %1810 = vmatprep.subr.bf16.mxu1 %v2309_v30  ;;  %v867_v26 = vpack.c.bf16 %v860_v21, %v860_v21 }
 0x518   : > { %v989_v22 = vpop.permute.xlu1 %988 }
 0x519   : > { %v991_v24 = vsel %vm721_vm4, %v989_v22, %v726_v63 }
 0x51a   : > { %v992_v25 = vsel %vm723_vm5, %v991_v24, %v730_v2 }
 0x51b   : > { %v994_v27 = vpack.c.bf16 %v992_v25, %v992_v25 }
 0x51c   : > { %v978_v28 = vpop.permute.xlu1 %977 }
 0x51d   : > { %v986_v29 = vsel %vm721_vm4, %v978_v28, %v981_v23  ;;  %1801 = vmatmul.mubr.msk.bf16.vlgmr.msra.gmra.mrb[4].mxu1 %vm736_vm6, %v867_v26  ;;  %v999_v31 = vsel %vm736_vm6, %v994_v27, 0 }
 0x51e   : > { %1811 = vmatpush3.bf16.xpose.msra.mxu1 %v999_v31  ;;  %1812 = vmatprep.mubr.msk.bf16.mxu1 %vm2310_vm2, %v2309_v30  ;;  %v987_v33 = vsel %vm723_vm5, %v986_v29, %v984_v32 }
 0x51f   : > { %1822 = vmatprep.subr.bf16.mxu1 %v2309_v30  ;;  %v993_v37 = vpack.c.bf16 %v987_v33, %v987_v33 }
 0x520   : > { %v1115_v34 = vpop.permute.xlu1 %1114 }
 0x521   : > { %v1117_v35 = vsel %vm721_vm4, %v1115_v34, %v726_v63  ;;  %v798_v34 = vpack.c.bf16 %v2708_v59, %v2708_v59 }
 0x522   : > { %v1118_v36 = vsel %vm723_vm5, %v1117_v35, %v730_v2 }
 0x523   : > { %v1120_v38 = vpack.c.bf16 %v1118_v36, %v1118_v36 }
 0x524   : > { %v1104_v39 = vpop.permute.xlu1 %1103 }
 0x525   : > { %1813 = vmatmul.mubr.msk.bf16.vlgmr.msra.gmra.mrb[8].mxu1 %vm736_vm6, %v993_v37  ;;  %v1125_v40 = vsel %vm736_vm6, %v1120_v38, 0  ;;  %v1112_v42 = vsel %vm721_vm4, %v1104_v39, %v1107_v41 }
 0x526   : > { %1823 = vmatpush3.bf16.xpose.msra.mxu1 %v1125_v40  ;;  %1824 = vmatprep.mubr.msk.bf16.mxu1 %vm2310_vm2, %v2309_v30 }
 0x527   : > { %1834 = vmatprep.subr.bf16.mxu1 %v2309_v30 }
 0x528   : > { %v1110_v43 = vpop.permute.xlu1 %1109 }
 0x529   : > { %v1113_v44 = vsel %vm723_vm5, %v1112_v42, %v1110_v43 }
 0x52a   : > { %v1119_v45 = vpack.c.bf16 %v1113_v44, %v1113_v44 }
 0x52d   : > { %1825 = vmatmul.mubr.msk.bf16.vlgmr.msra.gmra.mrb[12].mxu1 %vm736_vm6, %v1119_v45 }
 0x52e   : > { %1842 = vmatprep.mubr.msk.bf16.mxu1 %vm2310_vm2, %v2309_v30 }
 0x59c   : > { %v777_v49 = vpop.f32.mrb[0].mxu1 }
 0x59d   : > { %v783_v52 = vmul.f32 0.20412415, %v777_v49  ;;  %v1790_v53 = vpop.f32.mrb[1].mxu1 }
 0x59e   : > { %v780_v54 = vpop.f32.mrb[2].mxu1 }
 0x59f   : > { %v1791_v55 = vpop.f32.mrb[3].mxu1  ;;  %v784_v56 = vadd.f32 %v783_v52, %v478_v51 }
 0x5a1   : > { %v786_v57 = vsel %vm785_vm8, %v784_v56, -inf }
 0x5a2   : > { %787 = vmax.xlane.f32.xlu0 %v786_v57 }
 0x5f0   : > { %v909_v58 = vpop.f32.mrb[4].mxu1 }
 0x5f1   : > { %v915_v60 = vmul.f32 0.20412415, %v909_v58  ;;  %v1802_v61 = vpop.f32.mrb[5].mxu1 }
 0x5f2   : > { %v912_v62 = vpop.f32.mrb[6].mxu1 }
 0x5f3   : > { %v1803_v63 = vpop.f32.mrb[7].mxu1  ;;  %v916_v1 = vadd.f32 %v915_v60, %v478_v51 }
 0x5f5   : > { %v917_v2 = vsel %vm785_vm8, %v916_v1, -inf }
 0x5f6   : > { %918 = vmax.xlane.f32.xlu1 %v917_v2 }
 0x5f8   : > { %v1035_v3 = vpop.f32.mrb[8].mxu1 }
 0x5f9   : > { %v1041_v4 = vmul.f32 0.20412415, %v1035_v3  ;;  %v1814_v5 = vpop.f32.mrb[9].mxu1 }
 0x5fa   : > { %v1038_v6 = vpop.f32.mrb[10].mxu1  ;;  %v1998_v5 = vld [vmem:[#allocation10] sm:$0xff]  }
 0x5fb   : > { %v1815_v7 = vpop.f32.mrb[11].mxu1  ;;  %v1042_v9 = vadd.f32 %v1041_v4, %v478_v51  ;;  %1835 = vmatpush3.bf16.msra.mxu1 %v1998_v5  ;;  %v1999_v6 = vld [vmem:[#allocation10 + $0x8] sm:$0xff]  }
 0x5fc   : > { %1836 = vmatprep.subr.bf16.mxu1 %v2309_v30 }
 0x5fd   : > { %v1043_v10 = vsel %vm785_vm8, %v1042_v9, -inf }
 0x5fe   : > { %1044 = vmax.xlane.f32.xlu0 %v1043_v10 }
 0x5ff   : > { %1837 = vmatpush3.bf16.msra.mxu1 %v1999_v6 }
 0x600   : > { %v1161_v11 = vpop.f32.mrb[12].mxu1  ;;  %1838 = vmatprep.subr.bf16.mxu1 %v2309_v30 }
 0x601   : > { %v1167_v12 = vmul.f32 0.20412415, %v1161_v11  ;;  %v1826_v13 = vpop.f32.mrb[13].mxu1  ;;  %v2000_v11 = vld [vmem:[#allocation10 + $0x10] sm:$0xff]  }
 0x602   : > { %v1164_v14 = vpop.f32.mrb[14].mxu1 }
 0x603   : > { %v1827_v15 = vpop.f32.mrb[15].mxu1  ;;  %v1168_v16 = vadd.f32 %v1167_v12, %v478_v51  ;;  %1839 = vmatpush3.bf16.msra.mxu1 %v2000_v11 }
 0x604   : > { %1840 = vmatprep.subr.bf16.mxu1 %v2309_v30 }
 0x605   : > { %v1169_v17 = vsel %vm785_vm8, %v1168_v16, -inf }
 0x606   : > { %1170 = vmax.xlane.f32.xlu0 %v1169_v17 }
 0x62f   : > { %v788_v18 = vpop.xlane.xlu0 %787 }
 0x630   : > { %v789_v19 = vsub.f32 %v784_v56, %v788_v18 }
 0x632   : > { %v790_v20 = vmul.f32 1.442695, %v789_v19 }
 0x634   : > { %2026 = vpow2.f32 %v790_v20 }
 0x63e   : > { %v2027_v21 = vpop.eup %2026 }
 0x63f   : > { %v792_v22 = vsel %vm785_vm8, %v2027_v21, 0.0 }
 0x640   : > { %793 = vadd.xlane.f32.xlu0 %v792_v22 }
 0x683   : > { %v919_v23 = vpop.xlane.xlu1 %918 }
 0x684   : > { %v920_v24 = vsub.f32 %v916_v1, %v919_v23 }
 0x686   : > { %v921_v25 = vmul.f32 1.442695, %v920_v24 }
 0x688   : > { %2028 = vpow2.f32 %v921_v25 }
 0x68b   : > { %v1045_v26 = vpop.xlane.xlu0 %1044 }
 0x68c   : > { %v1046_v27 = vsub.f32 %v1042_v9, %v1045_v26 }
 0x68e   : > { %v1047_v28 = vmul.f32 1.442695, %v1046_v27 }
 0x690   : > { %2030 = vpow2.f32 %v1047_v28 }
 0x692   : > { %v2029_v29 = vpop.eup %2028 }
 0x693   : > { %v923_v31 = vsel %vm785_vm8, %v2029_v29, 0.0  ;;  %v1171_v35 = vpop.xlane.xlu0 %1170 }
 0x694   : > { %924 = vadd.xlane.f32.xlu1 %v923_v31  ;;  %v1172_v36 = vsub.f32 %v1168_v16, %v1171_v35  ;;  %v2001_v16 = vld [vmem:[#allocation10 + $0x18] sm:$0xff]  }
 0x695   : > { %1841 = vmatpush3.bf16.msra.mxu1 %v2001_v16 }
 0x696   : > { %v1173_v37 = vmul.f32 1.442695, %v1172_v36  ;;  %1846 = vmatprep.subr.bf16.mxu1 %v2309_v30  ;;  %v2004_v36 = vld [vmem:[%s2925_s9 + $0x4] ss:$8 sps:$4 sm:$0xff]  }
 0x698   : > { %2032 = vpow2.f32 %v1173_v37  ;;  %v2002_v37 = vld [vmem:[%s2925_s9] ss:$8 sps:$4 sm:$0xff]  }
 0x69a   : > { %v2031_v32 = vpop.eup %2030 }
 0x69b   : > { %v1049_v33 = vsel %vm785_vm8, %v2031_v32, 0.0 }
 0x69c   : > { %1050 = vadd.xlane.f32.xlu0 %v1049_v33 }
 0x6a2   : > { %v2033_v38 = vpop.eup %2032 }
 0x6a3   : > { %v1175_v39 = vsel %vm785_vm8, %v2033_v38, 0.0 }
 0x6a5   : > { %929 = vrot.lane.b32.xlu1 %v798_v34, %s2315_s16 }
 0x6a9   : > { %1055 = vrot.lane.b32.xlu1 %v798_v34, %s2314_s13 }
 0x6b2   : > { %800 = vrot.lane.b32.xlu0 %v798_v34, %s2307_s1 }
 0x6cd   : > { %1176 = vadd.xlane.f32.xlu1 %v1175_v39  ;;  %v794_v40 = vpop.xlane.xlu0 %793  ;;  %v2010_v39 = vld [vmem:[%s2925_s9 + $0x24] ss:$8 sps:$4 sm:$0xff]  }
 0x6ce   : > { %2034 = vrcp.f32 %v794_v40  ;;  %v2008_v40 = vld [vmem:[%s2925_s9 + $0x20] ss:$8 sps:$4 sm:$0xff]  }
 0x6d8   : > { %v2035_v59 = vpop.eup %2034 }
 0x6d9   : > { %v796_v43 = vmul.f32 %v2035_v59, %v2027_v21  ;;  %v2013_v59 = vld [vmem:[%s2925_s9 + $0x34] ss:$8 sps:$4 sm:$0xff]  }
 0x6db   : > { %v797_v47 = vpack.c.bf16 %v796_v43, %v796_v43 }
 0x6de   : > { %1181 = vrot.lane.b32.xlu1 %v798_v34, %s2316_s15 }
 0x721   : > { %v925_v41 = vpop.xlane.xlu1 %924 }
 0x722   : > { %2036 = vrcp.f32 %v925_v41  ;;  %v2011_v41 = vld [vmem:[%s2925_s9 + $0x30] ss:$8 sps:$4 sm:$0xff]  }
 0x725   : > { %v930_v46 = vpop.permute.xlu1 %929 }
 0x726   : > { %v935_v49 = vsel %vm805_vm9, %v930_v46, 0  ;;  %v1723_v46 = vld [vmem:[#allocation11] ss:$0 sm:$0xff] }
 0x729   : > { %v1051_v42 = vpop.xlane.xlu0 %1050  ;;  %v1056_v51 = vpop.permute.xlu1 %1055 }
 0x72a   : > { %2038 = vrcp.f32 %v1051_v42  ;;  %v1061_v54 = vsel %vm805_vm9, %v1056_v51, 0  ;;  %v2015_v51 = vld [vmem:[%s2926_s10 + $0x8] sm:$0xff]  }
 0x72c   : > { %v2037_v48 = vpop.eup %2036 }
 0x72d   : > { %v801_v44 = vpop.permute.xlu0 %800  ;;  %v927_v50 = vmul.f32 %v2037_v48, %v2029_v29 }
 0x72e   : > { %v807_v45 = vsel %vm805_vm9, %v801_v44, 0 }
 0x72f   : > { %1793 = vmatpush3.bf16.msra.mxu0 %v807_v45  ;;  %v928_v52 = vpack.c.bf16 %v927_v50, %v927_v50  ;;  %v2014_v50 = vld [vmem:[%s2926_s10] sm:$0xff]  }
 0x730   : > { %1804 = vmatprep.subr.bf16.mxu0 %v2309_v30 }
 0x732   : > { %1795 = vmatmul.mubr.msk.bf16.vlgmr.msra.gmra.mrb[8].mxu0 %vm785_vm8, %v797_v47 }
 0x733   : > { %1805 = vmatpush3.bf16.msra.mxu0 %v935_v49  ;;  %1806 = vmatprep.mubr.msk.bf16.mxu0 %vm2310_vm2, %v2309_v30 }
 0x734   : > { %1816 = vmatprep.subr.bf16.mxu0 %v2309_v30  ;;  %v2039_v53 = vpop.eup %2038 }
 0x735   : > { %v1053_v55 = vmul.f32 %v2039_v53, %v2031_v32  ;;  %v2017_v53 = vld [vmem:[%s2926_s10 + $0x18] sm:$0xff]  }
 0x737   : > { %v1054_v56 = vpack.c.bf16 %v1053_v55, %v1053_v55  ;;  %v2019_v55 = vld [vmem:[%s2926_s10 + $0x28] sm:$0xff]  }
 0x73a   : > { %1807 = vmatmul.mubr.msk.bf16.vlgmr.msra.gmra.mrb[12].mxu0 %vm785_vm8, %v928_v52  ;;  %v2016_v52 = vld [vmem:[%s2926_s10 + $0x10] sm:$0xff]  }
 0x73b   : > { %1817 = vmatpush3.bf16.msra.mxu0 %v1061_v54  ;;  %1818 = vmatprep.mubr.msk.bf16.mxu0 %vm2310_vm2, %v2309_v30  ;;  %v2018_v54 = vld [vmem:[%s2926_s10 + $0x20] sm:$0xff]  }
 0x73c   : > { %1828 = vmatprep.subr.bf16.mxu0 %v2309_v30 }
 0x742   : > { %1819 = vmatmul.mubr.msk.bf16.vlgmr.msra.gmra.mrb[16].mxu0 %vm785_vm8, %v1054_v56  ;;  %v2020_v56 = vld [vmem:[%s2926_s10 + $0x30] sm:$0xff]  }
 0x743   : > { %1830 = vmatprep.mubr.msk.bf16.mxu0 %vm2310_vm2, %v2309_v30 }
 0x75a   : > { %v1177_v57 = vpop.xlane.xlu1 %1176 }
 0x75b   : > { %2040 = vrcp.f32 %v1177_v57  ;;  %v2021_v57 = vld [vmem:[%s2926_s10 + $0x38] sm:$0xff]  }
 0x75e   : > { %v1182_v58 = vpop.permute.xlu1 %1181 }
 0x75f   : > { %v1187_v60 = vsel %vm805_vm9, %v1182_v58, 0 }
 0x760   : > { %1829 = vmatpush3.bf16.msra.mxu0 %v1187_v60 }
 0x761   : > { %1390 = vmatprep.subr.bf16.mxu0 %v2004_v36 }
 0x765   : > { %v2041_v61 = vpop.eup %2040 }
 0x766   : > { %v1179_v62 = vmul.f32 %v2041_v61, %v2033_v38  ;;  %v2005_v38 = vld [vmem:[%s2925_s9 + $0x10] ss:$8 sps:$4 sm:$0xff]  }
 0x768   : > { %v1180_v63 = vpack.c.bf16 %v1179_v62, %v1179_v62 }
 0x76a   : > { %1831 = vmatmul.mubr.msk.bf16.vlgmr.msra.gmra.mrb[20].mxu0 %vm785_vm8, %v1180_v63 }
 0x76b   : > { %1422 = vmatprep.mubr.bf16.mxu0 %v2306_v8  ;;  %1391 = vmatpush1.bf16.msra.mxu0 %v2002_v37 }
 0x805   : > { %v843_v1 = vpop.f32.mrb[8].mxu0 }
 0x806   : > { %v1796_v2 = vpop.f32.mrb[9].mxu0 }
 0x807   : > { %v846_v3 = vpop.f32.mrb[10].mxu0 }
 0x808   : > { %v1797_v4 = vpop.f32.mrb[11].mxu0 }
 0x80d   : > { %v971_v7 = vpop.f32.mrb[12].mxu0 }
 0x80e   : > { %1230 = vrot.lane.b32.xlu0 %v971_v7, %s2316_s15  ;;  %v1808_v9 = vpop.f32.mrb[13].mxu0 }
 0x80f   : > { %v974_v10 = vpop.f32.mrb[14].mxu0 }
 0x810   : > { %v1809_v12 = vpop.f32.mrb[15].mxu0 }
 0x815   : > { %v1097_v8 = vpop.f32.mrb[16].mxu0 }
 0x816   : > { %1234 = vrot.lane.b32.xlu1 %v1097_v8, %s2314_s13  ;;  %v1820_v13 = vpop.f32.mrb[17].mxu0  ;;  %s2218_s13 = scalar_lea.vmem %s2873_s29, 128 }
 0x817   : > { %v1100_v14 = vpop.f32.mrb[18].mxu0  ;;  %p2219_p11 = scmp.ne.s32.totalorder %s2873_s29, %s2218_s13 }
 0x818   : > { %v1821_v15 = vpop.f32.mrb[19].mxu0 }
 0x819   : > { %p2220_p5 = pnand %p2219_p11, %p2959_p13 }
 0x81b   : > { %p2221_p7 = pneg %p2220_p5 }
 0x83d   : > { %v1223_v17 = vpop.f32.mrb[20].mxu0 }
 0x83e   : > { %1238 = vrot.lane.b32.xlu0 %v1223_v17, %s2315_s16  ;;  %v1832_v18 = vpop.f32.mrb[21].mxu0  ;;  %s2325_s16 = smov [#allocation13]  }
 0x83f   : > { %v1226_v19 = vpop.f32.mrb[22].mxu0  ;;  %s2222_s15 = sshll.u32 %s2325_s16, 4  ;;  %s2223_s15 = int_to_ptr.vmem [resolvable:$false] %s2222_s15 }
 0x840   : > { %v1833_v20 = vpop.f32.mrb[23].mxu0  ;;  %s2224_s12 = scalar_lea.vmem %s2223_s15, 256  ;;  %p2225_p4 = scmp.lt.s32.totalorder %s2873_s29, %s2223_s15 }
 0x841   : > { %p2226_p1 = scmp.lt.s32.totalorder %s2224_s12, %s2218_s13 }
 0x843   : > { %p2227_p3 = por %p2226_p1, %p2225_p4 }
 0x845   : > { %p2228_p9 = pnand %p2227_p3, %p2221_p7 }
 0x880   : > { %v1231_v21 = vpop.permute.xlu0 %1230 }
 0x881   : > { %v1241_v23 = vsel %vm721_vm4, %v843_v1, %v1231_v21 }
 0x888   : > { %v1235_v22 = vpop.permute.xlu1 %1234 }
 0x889   : > { %v1242_v24 = vsel %vm596_vm1, %v1241_v23, %v1235_v22 }
 0x8b0   : > { %v1239_v25 = vpop.permute.xlu0 %1238 }
 0x8b1   : > { %v1244_v26 = vsel %vm1243_vm10, %v1242_v24, %v1239_v25 }
 0x8b2   : > { %v1245_v27 = vpack.c.bf16 %v1244_v26, %v1244_v26 }
 0x8b4   : > { %1843 = vmatmul.mubr.msk.bf16.vlgmr.msra.gmra.mrb[16].mxu1 %vm481_vm0, %v1245_v27 }
 0x8b5   : > { %1862 = vmatprep.mubr.msk.bf16.mxu1 %vm2310_vm2, %v2309_v30  ;;  %1847 = vmatpush3.bf16.msra.mxu1 %v2014_v50 }
 0x8b6   : > { %1848 = vmatprep.subr.bf16.mxu1 %v2309_v30 }
 0x8b9   : > { %1849 = vmatpush3.bf16.msra.mxu1 %v2015_v51 }
 0x8ba   : > { %1850 = vmatprep.subr.bf16.mxu1 %v2309_v30 }
 0x8bd   : > { %1851 = vmatpush3.bf16.msra.mxu1 %v2016_v52 }
 0x8be   : > { %1852 = vmatprep.subr.bf16.mxu1 %v2309_v30 }
 0x8c1   : > { %1853 = vmatpush3.bf16.msra.mxu1 %v2017_v53 }
 0x8c2   : > { %1854 = vmatprep.subr.bf16.mxu1 %v2309_v30 }
 0x8c5   : > { %1855 = vmatpush3.bf16.msra.mxu1 %v2018_v54 }
 0x8c6   : > { %1856 = vmatprep.subr.bf16.mxu1 %v2309_v30 }
 0x8c9   : > { %1857 = vmatpush3.bf16.msra.mxu1 %v2019_v55 }
 0x8ca   : > { %1858 = vmatprep.subr.bf16.mxu1 %v2309_v30 }
 0x8cd   : > { %1859 = vmatpush3.bf16.msra.mxu1 %v2020_v56 }
 0x8ce   : > { %1860 = vmatprep.subr.bf16.mxu1 %v2309_v30 }
 0x8d1   : > { %1861 = vmatpush3.bf16.msra.mxu1 %v2021_v57 }
 0x987   : > { %v1315_v28 = vpop.f32.mrb[16].mxu1 }
 0x988   : > { %v2802_v29 = vadd.f32 %v1315_v28, %v2635_v0  ;;  %v1844_v31 = vpop.f32.mrb[17].mxu1  ;;  %v2007_v0 = vld [vmem:[%s2925_s9 + $0x14] ss:$8 sps:$4 sm:$0xff]  }
 0x989   : > { %v1318_v32 = vpop.f32.mrb[18].mxu1  ;;  %1392 = vmatprep.subr.bf16.mxu0 %v2007_v0 }
 0x98a   : > { %v1845_v33 = vpop.f32.mrb[19].mxu1  ;;  %v1323_v34 = vmul.f32 %v2802_v29, %v2802_v29  ;;  %1393 = vmatpush1.bf16.msra.mxu0 %v2005_v38 }
 0x98b   : > { %1394 = vmatprep.subr.bf16.mxu0 %v2010_v39 }
 0x98c   : > { %v1324_v35 = vsel %vm481_vm0, %v1323_v34, 0.0 }
 0x98d   : > { %1325 = vadd.xlane.f32.xlu1 %v1324_v35 }
 0x98e   : > { %1395 = vmatpush1.bf16.msra.mxu0 %v2008_v40 }
 0x98f   : > { %1396 = vmatprep.subr.bf16.mxu0 %v2013_v59 }
 0x992   : > { %1397 = vmatpush1.bf16.msra.mxu0 %v2011_v41 }
 0xa1a   : > { %v1326_v42 = vpop.xlane.xlu1 %1325 }
 0xa1b   : > { %v1327_v43 = vmul.f32 0.015625, %v1326_v42 }
 0xa1d   : > { %v1328_v44 = vadd.f32 1e-06, %v1327_v43 }
 0xa1f   : > { %2042 = vrsqrt.f32 %v1328_v44 }
 0xa29   : > { %v2043_v45 = vpop.eup %2042 }
 0xa2a   : > { %v1330_v47 = vmul.f32 %v2043_v45, %v2802_v29 }
 0xa2c   : > { %v1337_v48 = vmul.f32 %v1723_v46, %v1330_v47 }
 0xa2e   : > { %v1338_v49 = vpack.c.bf16 %v1337_v48, %v1337_v48 }
 0xa30   : > { %1732 = vmatmul.mubr.msk.bf16.vlgmr.msra.gmra.mrb[24].mxu0 %vm481_vm0, %v1338_v49 }
 0xb03   : > { %v1424_v58 = vpop.f32.mrb[24].mxu0 }
 0xb04   : > { %v1431_v60 = vsub.f32 0.0, %v1424_v58  ;;  %v1426_v61 = vpop.f32.mrb[25].mxu0 }
 0xb05   : > { %v1428_v62 = vpop.f32.mrb[26].mxu0 }
 0xb06   : > { %v1432_v63 = vmul.f32 1.442695, %v1431_v60  ;;  %v1429_v1 = vpop.f32.mrb[27].mxu0 }
 0xb08   : > { %2044 = vpow2.f32 %v1432_v63 }
 0xb12   : > { %v2045_v2 = vpop.eup %2044 }
 0xb13   : > { %v1434_v3 = vadd.f32 1.0, %v2045_v2 }
 0xb15   : > { %2046 = vrcp.f32 %v1434_v3 }
 0xb1f   : > { %v2047_v4 = vpop.eup %2046 }
 0xb20   : > { %v1437_v30 = vmul.f32 %v2047_v4, %v1424_v58 }
 0xb22   : > { %v1438_v5 = vmul.f32 %v1437_v30, %v1426_v61 }
 0xb24   : > { %v1439_v6 = vpack.c.bf16 %v1438_v5, %v1438_v5 }
 0xb26   : > { %1863 = vmatmul.mubr.bf16.vlgmr.msra.gmra.mrb[20].mxu1 %v1439_v6 }
 0xbf9   : > { %v1538_v7 = vpop.f32.mrb[20].mxu1 }
 0xbfa   : > { %v1544_v9 = vadd.f32 %v1538_v7, %v2802_v29  ;;  %v1864_v10 = vpop.f32.mrb[21].mxu1 }
 0xbfb   : > { %v1541_v11 = vpop.f32.mrb[22].mxu1 }
 0xbfc   : > { %v1865_v12 = vpop.f32.mrb[23].mxu1  ;;  %1545 = vst.msk [vmem:[%s468_s28] sm:$0xff] %vm481_vm0, %v1544_v9 }
 0xbfd   : > { %2231 = shalt.err (!%p2228_p9)
}
 0xbfe   : > { %s2232_s2 = scalar_lea.hbm %s2871_s30, 128  ;;  %s2236_s28 = scalar_lea.hbm %s2958_s14, 256 }
 0xbff   : > { %p2233_p6 = scmp.ne.s32.totalorder %s2871_s30, %s2232_s2  ;;  %p2237_p8 = scmp.lt.u32.totalorder %s2871_s30, %s2958_s14 }
 0xc00   : > { %p2238_p10 = scmp.lt.u32.totalorder %s2236_s28, %s2232_s2  ;;  %p2240_p11 = scmp.lt.u32.totalorder %s2232_s2, %s2871_s30 }
 0xc01   : > { %p2234_p0 = pnand %p2233_p6, %p2959_p13 }
 0xc02   : > { %p2239_p12 = por %p2238_p10, %p2237_p8 }
 0xc03   : > { %p2235_p2 = pneg %p2234_p0 }
 0xc04   : > { %p2241_p5 = por %p2240_p11, %p2239_p12 }
 0xc06   : > { %p2242_p7 = pnand %p2241_p5, %p2235_p2 }
 0xc08   : > { %2245 = shalt.err (!%p2242_p7)
}
 0xc09   : > { %1888 = dma.vmem_to_hbm [thread:$0]  (%p2959_p13), %s2873_s29, 128, %s2871_s30, %s1547_s23  }
 0xc0a PF: > { %s1572_s13 = sand.u32 1, %s2284_s17   ;;  %p2960_p4 = scmp.ne.s32.totalorder %s2948_s26, 0 }
 0xc0b   : > { %p2961_p1 = scmp.ge.s32.totalorder %s2296_s20, 2  ;;  %s1573_s16 = scalar_lea.sflag [#allocation4], %s1572_s13 }
 0xc0d   : > { %p1911_p3 = pnand %p2961_p1, %p2960_p4 }
 0xc0f   : > { %2279 = dma.done.wait (!%p1911_p3), %s1573_s16, 128  }
 0xc10   : > { %2281 = vsyncadd (!%p1911_p3), %s1573_s16, 4294967168  ;;  %p27_p9 = scmp.ge.s32.totalorder %s2543_s27, 4   ;;  %s2962_s17 = smov %s2288_s18 }
 0xc11   : > { %s2963_s18 = smov %s2292_s19  ;;  %s2964_s19 = smov %s2555_s25 }
 0xc12   : > { %s2965_s20 = smov %s2543_s27  ;;  %29 = sbr.rel (!%p27_p9) target bundleno = 12 (0xc), region = 129 }
 0xc19   :  { %1578 = vsyncpa [#allocation3], 1 }
 0xc1a   :  { %1580 = vsyncpa [#allocation3 + $0x1], 1 }
 0xc1b   :  { %1581 = vsyncpa [#allocation6], 1 }
 0xc1c   :  { %1582 = vsyncpa [#allocation9], 1 }
 0xc1d   :  { %1583 = vsyncpa [#allocation12], 1 }
 0xc1e   :  { %1584 = vsyncpa [#allocation4], 1 }
 0xc1f   :  { %1586 = vsyncpa [#allocation4 + $0x1], 1 }

</bundles_post_ra>
